<compile_context>
chip_gen: v6e
topology: v6e:2x2x1
jax: 0.10.0
libtpu: 0.0.40
codegen_flags: <defaults>
</compile_context>

<pallas_src>
import functools

import jax
import jax.numpy as jnp
from jax.experimental import pallas as pl
from jax.experimental.pallas import tpu as pltpu

EPS = 1e-5  # PyTorch nn.LayerNorm default eps


def transformer_block_kernel(x_ref, mask_ref,
                             wqkv_ref, wo_ref,
                             g1_ref, b1_ref,
                             wff1_ref, bff1_ref, wff2_ref, bff2_ref,
                             g2_ref, b2_ref,
                             o_ref, *, embed_size, heads):
    """One TransformerBlock for a single batch element (all heads fused)."""
    E = embed_size
    S = x_ref.shape[1]
    hd = E // heads

    x = x_ref[0].astype(jnp.float32)                       # (S, E)
    xb = x.astype(jnp.bfloat16)

    # ---- fused Q/K/V projection: one lane-dense (S,E)@(E,3E) MXU pass ----
    qkv = jnp.dot(xb, wqkv_ref[...],
                  preferred_element_type=jnp.float32)      # (S, 3E) f32

    scale = 1.0 / (float(E) ** 0.5)
    q_all = qkv[:, 0:E] * scale                            # scale folded into q
    k_all = qkv[:, E:2 * E]
    v_all = qkv[:, 2 * E:3 * E]

    # additive key-padding bias, computed once per step (no per-head rebroadcast)
    key_mask = mask_ref[0]                                 # (1, S) int32
    bias = jnp.where(key_mask == 0, jnp.float32(-1e20), jnp.float32(0.0))

    # ---- per-head attention (heads=4 unrolled; tiny 2-D MXU matmuls) ----
    head_outs = []
    for h in range(heads):
        sl = slice(h * hd, (h + 1) * hd)
        qh = q_all[:, sl].astype(jnp.bfloat16)             # (S, hd)
        kh = k_all[:, sl].astype(jnp.bfloat16)             # (S, hd)
        vh = v_all[:, sl].astype(jnp.bfloat16)             # (S, hd)

        # scores = (q/sqrt(E)) @ k^T  + mask bias   (contract last dims, no transpose)
        s = jax.lax.dot_general(qh, kh, (((1,), (1,)), ((), ())),
                                preferred_element_type=jnp.float32)   # (S, S)
        s = s + bias

        # numerically stable softmax along the key axis
        s = s - jnp.max(s, axis=-1, keepdims=True)
        p = jnp.exp(s)
        p = p * pl.reciprocal(jnp.sum(p, axis=-1, keepdims=True), approx=True)

        head_outs.append(jnp.dot(p.astype(jnp.bfloat16), vh,
                                 preferred_element_type=jnp.float32))  # (S, hd)

    # concat heads along lanes -> (S, E); ONE dense output projection
    attn = jnp.concatenate(head_outs, axis=-1)             # (S, E) f32
    attn_out = jnp.dot(attn.astype(jnp.bfloat16), wo_ref[...],
                       preferred_element_type=jnp.float32)  # (S, E)

    # ---- residual + LN1 + FFN + residual + LN2 (f32 VPU/EUP math) ----
    y = attn_out + x
    mu = jnp.mean(y, axis=-1, keepdims=True)
    var = jnp.mean((y - mu) ** 2, axis=-1, keepdims=True)
    y = (y - mu) * jax.lax.rsqrt(var + EPS) * g1_ref[...] + b1_ref[...]

    h1 = jnp.dot(y.astype(jnp.bfloat16), wff1_ref[...],
                 preferred_element_type=jnp.float32) + bff1_ref[...]
    h1 = jnp.maximum(h1, 0.0)
    ff = jnp.dot(h1.astype(jnp.bfloat16), wff2_ref[...],
                 preferred_element_type=jnp.float32) + bff2_ref[...]

    z = ff + y
    mu2 = jnp.mean(z, axis=-1, keepdims=True)
    var2 = jnp.mean((z - mu2) ** 2, axis=-1, keepdims=True)
    z = (z - mu2) * jax.lax.rsqrt(var2 + EPS) * g2_ref[...] + b2_ref[...]

    o_ref[0] = z.astype(o_ref.dtype)


def transformer_block(x, key_mask, layer_params, heads):
    """x: (N, S, E) float32, key_mask: (N, 1, S) int32 (1 = keep, 0 = pad)."""
    N, S, E = x.shape
    F = layer_params["wff1"].shape[1]

    kernel = functools.partial(transformer_block_kernel,
                               embed_size=E, heads=heads)

    def const_spec(shape):   # same full-array block every grid step
        return pl.BlockSpec(shape, lambda b, _n=len(shape): (0,) * _n)

    in_specs = [
        pl.BlockSpec((1, S, E), lambda b: (b, 0, 0)),      # x (per batch)
        pl.BlockSpec((1, 1, S), lambda b: (b, 0, 0)),      # key mask
        const_spec((E, 3 * E)),                            # fused Wqkv
        const_spec((E, E)),                                # Wo
        const_spec((1, E)), const_spec((1, E)),            # LN1 gamma/beta
        const_spec((E, F)), const_spec((1, F)),            # FFN in  W/b
        const_spec((F, E)), const_spec((1, E)),            # FFN out W/b
        const_spec((1, E)), const_spec((1, E)),            # LN2 gamma/beta
    ]

    return pl.pallas_call(
        kernel,
        out_shape=jax.ShapeDtypeStruct((N, S, E), x.dtype),
        grid_spec=pltpu.PrefetchScalarGridSpec(
            num_scalar_prefetch=0,
            grid=(N,),
            in_specs=in_specs,
            out_specs=pl.BlockSpec((1, S, E), lambda b: (b, 0, 0)),
        ),
        compiler_params=pltpu.CompilerParams(
            dimension_semantics=("parallel",),
            vmem_limit_bytes=32 * 1024 * 1024),
    )(x, key_mask,
      layer_params["wqkv"], layer_params["wo"],
      layer_params["g1"], layer_params["b1"],
      layer_params["wff1"], layer_params["bff1"],
      layer_params["wff2"], layer_params["bff2"],
      layer_params["g2"], layer_params["b2"])


def init_params(key, *, src_vocab_size, embed_size, heads, num_layers,
                forward_expansion, max_length):
    """Synthetic parameters mirroring the PyTorch module's shapes.

    Linear weights are stored pre-transposed (in, out) so the kernel computes
    x @ W (== PyTorch x @ W_pt.T).  Q/K/V projections are fused into a single
    lane-dense (E, 3E) bf16 weight; Wo is a dense (E, E) bf16 weight."""
    E = embed_size
    F = forward_expansion * embed_size
    keys = jax.random.split(key, 2 + num_layers * 6)

    def nrm(k, shape, scale=0.02):
        return (scale * jax.random.normal(k, shape)).astype(jnp.float32)

    params = {
        "word_emb": nrm(keys[0], (src_vocab_size, E), 1.0),
        "pos_emb": nrm(keys[1], (max_length, E), 1.0),
        "layers": [],
    }
    for l in range(num_layers):
        ks = keys[2 + 6 * l: 2 + 6 * (l + 1)]
        wq = nrm(ks[0], (E, E))
        wk = nrm(ks[1], (E, E))
        wv = nrm(ks[2], (E, E))
        wo = nrm(ks[3], (E, E))
        layer = {
            # fused, lane-dense QKV weight: columns = [Wq | Wk | Wv]
            "wqkv": jnp.concatenate([wq, wk, wv], axis=1).astype(jnp.bfloat16),
            "wo": wo.astype(jnp.bfloat16),
            # LayerNorm default init: gamma=1, beta=0 (kept f32 for VPU math)
            "g1": jnp.ones((1, E), jnp.float32),
            "b1": jnp.zeros((1, E), jnp.float32),
            "g2": jnp.ones((1, E), jnp.float32),
            "b2": jnp.zeros((1, E), jnp.float32),
            "wff1": nrm(ks[4], (E, F)).astype(jnp.bfloat16),
            "bff1": jnp.zeros((1, F), jnp.float32),
            "wff2": nrm(ks[5], (F, E)).astype(jnp.bfloat16),
            "bff2": jnp.zeros((1, E), jnp.float32),
        }
        params["layers"].append(layer)
    return params


def encoder_forward(src_x, src_mask, params, heads):
    """src_x: (N, S) int32 token ids; src_mask: (N, 1, 1, S) bool."""
    N, S = src_x.shape
    # word + position embedding (gather is plain-JAX glue; dropout = identity)
    pos = jnp.arange(S)
    x = (params["word_emb"][src_x] +
         params["pos_emb"][pos][None, :, :]).astype(jnp.float32)

    # compact key mask (N, 1, S); broadcast over queries happens in-kernel
    key_mask = src_mask.reshape(N, 1, S).astype(jnp.int32)

    for layer_params in params["layers"]:
        x = transformer_block(x, key_mask, layer_params, heads)
    return x


if __name__ == "__main__":
    # small shapes consistent with the module's forward (lane-dense E=128)
    N, S = 2, 8
    src_vocab_size = 32
    embed_size = 128
    heads = 4            # head_dim = 32
    num_layers = 2
    forward_expansion = 4
    max_length = 16

    key = jax.random.PRNGKey(0)
    k_tok, k_par = jax.random.split(key)

    src_x = jax.random.randint(k_tok, (N, S), 0, src_vocab_size, dtype=jnp.int32)
    # per-sentence lengths -> padding mask, shape (N, 1, 1, S) as in the spec
    lengths = jnp.array([6, 8], dtype=jnp.int32)
    src_mask = (jnp.arange(S)[None, :] < lengths[:, None]).reshape(N, 1, 1, S)

    params = init_params(k_par,
                         src_vocab_size=src_vocab_size,
                         embed_size=embed_size,
                         heads=heads,
                         num_layers=num_layers,
                         forward_expansion=forward_expansion,
                         max_length=max_length)

    out = encoder_forward(src_x, src_mask, params, heads)
    out = jax.block_until_ready(out)
    assert out.shape == (N, S, embed_size)
    assert bool(jnp.all(jnp.isfinite(out)))
    print("KERNEL_OK")
</pallas_src>

<mosaic_0001>
module attributes {stable_mosaic.version = 11 : i64} {
  func.func @transformer_block_kernel(%arg0: i32, %arg1: memref<1x8x128xf32, #tpu.memory_space<vmem>>, %arg2: memref<1x1x8xi32, #tpu.memory_space<vmem>>, %arg3: memref<128x384xbf16, #tpu.memory_space<vmem>>, %arg4: memref<128x128xbf16, #tpu.memory_space<vmem>>, %arg5: memref<1x128xf32, #tpu.memory_space<vmem>>, %arg6: memref<1x128xf32, #tpu.memory_space<vmem>>, %arg7: memref<128x512xbf16, #tpu.memory_space<vmem>>, %arg8: memref<1x512xf32, #tpu.memory_space<vmem>>, %arg9: memref<512x128xbf16, #tpu.memory_space<vmem>>, %arg10: memref<1x128xf32, #tpu.memory_space<vmem>>, %arg11: memref<1x128xf32, #tpu.memory_space<vmem>>, %arg12: memref<1x128xf32, #tpu.memory_space<vmem>>, %arg13: memref<1x8x128xf32, #tpu.memory_space<vmem>>) attributes {dimension_semantics = [#tpu.dimension_semantics<parallel>], iteration_bounds = array<i64: 2>, scalar_prefetch = 0 : i64, scratch_operands = 0 : i64, tpu.core_type = #tpu.core_type<tc>, window_params = [{transform_indices = @transform_0, window_bounds = array<i64: 1, 8, 128>}, {transform_indices = @transform_1, window_bounds = array<i64: 1, 1, 8>}, {pipeline_mode = #tpu.pipeline_mode<synchronous>, transform_indices = @transform_2, window_bounds = array<i64: 128, 384>}, {pipeline_mode = #tpu.pipeline_mode<synchronous>, transform_indices = @transform_3, window_bounds = array<i64: 128, 128>}, {pipeline_mode = #tpu.pipeline_mode<synchronous>, transform_indices = @transform_4, window_bounds = array<i64: 1, 128>}, {pipeline_mode = #tpu.pipeline_mode<synchronous>, transform_indices = @transform_5, window_bounds = array<i64: 1, 128>}, {pipeline_mode = #tpu.pipeline_mode<synchronous>, transform_indices = @transform_6, window_bounds = array<i64: 128, 512>}, {pipeline_mode = #tpu.pipeline_mode<synchronous>, transform_indices = @transform_7, window_bounds = array<i64: 1, 512>}, {pipeline_mode = #tpu.pipeline_mode<synchronous>, transform_indices = @transform_8, window_bounds = array<i64: 512, 128>}, {pipeline_mode = #tpu.pipeline_mode<synchronous>, transform_indices = @transform_9, window_bounds = array<i64: 1, 128>}, {pipeline_mode = #tpu.pipeline_mode<synchronous>, transform_indices = @transform_10, window_bounds = array<i64: 1, 128>}, {pipeline_mode = #tpu.pipeline_mode<synchronous>, transform_indices = @transform_11, window_bounds = array<i64: 1, 128>}, {transform_indices = @transform_12, window_bounds = array<i64: 1, 8, 128>}]} {
    %c0 = arith.constant 0 : index
    %c0_0 = arith.constant 0 : index
    %c0_1 = arith.constant 0 : index
    %0 = vector.load %arg1[%c0, %c0_0, %c0_1] : memref<1x8x128xf32, #tpu.memory_space<vmem>>, vector<1x8x128xf32>
    %1 = vector.shape_cast %0 : vector<1x8x128xf32> to vector<8x128xf32>
    %2 = arith.truncf %1 : vector<8x128xf32> to vector<8x128xbf16>
    %c0_2 = arith.constant 0 : index
    %c0_3 = arith.constant 0 : index
    %3 = vector.load %arg3[%c0_2, %c0_3] : memref<128x384xbf16, #tpu.memory_space<vmem>>, vector<128x384xbf16>
    %cst = arith.constant dense<0.000000e+00> : vector<8x384xf32>
    %4 = tpu.matmul %2, %3, %cst {dimension_numbers = #tpu.dot_dimension_numbers<[1], [0], [0], [1], [0, 0, 1, 1], [], []>} : vector<8x128xbf16>, vector<128x384xbf16>, vector<8x384xf32> -> vector<8x384xf32>
    %5 = vector.extract_strided_slice %4 {offsets = [0, 0], sizes = [8, 128], strides = [1, 1]} : vector<8x384xf32> to vector<8x128xf32>
    %cst_4 = arith.constant 0.0883883461 : f32
    %6 = vector.broadcast %cst_4 : f32 to vector<8x128xf32>
    %7 = arith.mulf %5, %6 : vector<8x128xf32>
    %8 = vector.extract_strided_slice %4 {offsets = [0, 128], sizes = [8, 128], strides = [1, 1]} : vector<8x384xf32> to vector<8x128xf32>
    %9 = vector.extract_strided_slice %4 {offsets = [0, 256], sizes = [8, 128], strides = [1, 1]} : vector<8x384xf32> to vector<8x128xf32>
    %c0_5 = arith.constant 0 : index
    %c0_6 = arith.constant 0 : index
    %c0_7 = arith.constant 0 : index
    %10 = vector.load %arg2[%c0_5, %c0_6, %c0_7] : memref<1x1x8xi32, #tpu.memory_space<vmem>>, vector<1x1x8xi32>
    %11 = vector.shape_cast %10 : vector<1x1x8xi32> to vector<1x8xi32>
    %c0_i32 = arith.constant 0 : i32
    %12 = vector.broadcast %c0_i32 : i32 to vector<1x8xi32>
    %13 = arith.cmpi eq, %11, %12 : vector<1x8xi32>
    %cst_8 = arith.constant -1.000000e+20 : f32
    %cst_9 = arith.constant 0.000000e+00 : f32
    %14 = vector.broadcast %cst_8 : f32 to vector<1x8xf32>
    %15 = vector.broadcast %cst_9 : f32 to vector<1x8xf32>
    %16 = arith.select %13, %14, %15 : vector<1x8xi1>, vector<1x8xf32>
    %17 = vector.extract_strided_slice %7 {offsets = [0, 0], sizes = [8, 32], strides = [1, 1]} : vector<8x128xf32> to vector<8x32xf32>
    %18 = arith.truncf %17 : vector<8x32xf32> to vector<8x32xbf16>
    %19 = vector.extract_strided_slice %8 {offsets = [0, 0], sizes = [8, 32], strides = [1, 1]} : vector<8x128xf32> to vector<8x32xf32>
    %20 = arith.truncf %19 : vector<8x32xf32> to vector<8x32xbf16>
    %21 = vector.extract_strided_slice %9 {offsets = [0, 0], sizes = [8, 32], strides = [1, 1]} : vector<8x128xf32> to vector<8x32xf32>
    %22 = arith.truncf %21 : vector<8x32xf32> to vector<8x32xbf16>
    %cst_10 = arith.constant dense<0.000000e+00> : vector<8x8xf32>
    %23 = tpu.matmul %18, %20, %cst_10 {dimension_numbers = #tpu.dot_dimension_numbers<[1], [1], [0], [0], [0, 0, 1, 0], [], []>} : vector<8x32xbf16>, vector<8x32xbf16>, vector<8x8xf32> -> vector<8x8xf32>
    %24 = vector.broadcast %16 : vector<1x8xf32> to vector<8x8xf32>
    %25 = arith.addf %23, %24 : vector<8x8xf32>
    %cst_11 = arith.constant dense<0xFF800000> : vector<8xf32>
    %26 = vector.multi_reduction <maximumf>, %25, %cst_11 [1] : vector<8x8xf32> to vector<8xf32>
    %27 = vector.shape_cast %26 : vector<8xf32> to vector<8x1xf32>
    %28 = vector.broadcast %27 : vector<8x1xf32> to vector<8x8xf32>
    %29 = arith.subf %25, %28 : vector<8x8xf32>
    %30 = math.exp %29 : vector<8x8xf32>
    %cst_12 = arith.constant dense<0.000000e+00> : vector<8xf32>
    %31 = vector.multi_reduction <add>, %30, %cst_12 [1] : vector<8x8xf32> to vector<8xf32>
    %32 = vector.shape_cast %31 : vector<8xf32> to vector<8x1xf32>
    %33 = tpu.reciprocal %32 {approx = true} : vector<8x1xf32> -> vector<8x1xf32>
    %34 = vector.broadcast %33 : vector<8x1xf32> to vector<8x8xf32>
    %35 = arith.mulf %30, %34 : vector<8x8xf32>
    %36 = arith.truncf %35 : vector<8x8xf32> to vector<8x8xbf16>
    %cst_13 = arith.constant dense<0.000000e+00> : vector<8x32xf32>
    %37 = tpu.matmul %36, %22, %cst_13 {dimension_numbers = #tpu.dot_dimension_numbers<[1], [0], [0], [1], [0, 0, 1, 1], [], []>} : vector<8x8xbf16>, vector<8x32xbf16>, vector<8x32xf32> -> vector<8x32xf32>
    %38 = vector.extract_strided_slice %7 {offsets = [0, 32], sizes = [8, 32], strides = [1, 1]} : vector<8x128xf32> to vector<8x32xf32>
    %39 = arith.truncf %38 : vector<8x32xf32> to vector<8x32xbf16>
    %40 = vector.extract_strided_slice %8 {offsets = [0, 32], sizes = [8, 32], strides = [1, 1]} : vector<8x128xf32> to vector<8x32xf32>
    %41 = arith.truncf %40 : vector<8x32xf32> to vector<8x32xbf16>
    %42 = vector.extract_strided_slice %9 {offsets = [0, 32], sizes = [8, 32], strides = [1, 1]} : vector<8x128xf32> to vector<8x32xf32>
    %43 = arith.truncf %42 : vector<8x32xf32> to vector<8x32xbf16>
    %cst_14 = arith.constant dense<0.000000e+00> : vector<8x8xf32>
    %44 = tpu.matmul %39, %41, %cst_14 {dimension_numbers = #tpu.dot_dimension_numbers<[1], [1], [0], [0], [0, 0, 1, 0], [], []>} : vector<8x32xbf16>, vector<8x32xbf16>, vector<8x8xf32> -> vector<8x8xf32>
    %45 = vector.broadcast %16 : vector<1x8xf32> to vector<8x8xf32>
    %46 = arith.addf %44, %45 : vector<8x8xf32>
    %cst_15 = arith.constant dense<0xFF800000> : vector<8xf32>
    %47 = vector.multi_reduction <maximumf>, %46, %cst_15 [1] : vector<8x8xf32> to vector<8xf32>
    %48 = vector.shape_cast %47 : vector<8xf32> to vector<8x1xf32>
    %49 = vector.broadcast %48 : vector<8x1xf32> to vector<8x8xf32>
    %50 = arith.subf %46, %49 : vector<8x8xf32>
    %51 = math.exp %50 : vector<8x8xf32>
    %cst_16 = arith.constant dense<0.000000e+00> : vector<8xf32>
    %52 = vector.multi_reduction <add>, %51, %cst_16 [1] : vector<8x8xf32> to vector<8xf32>
    %53 = vector.shape_cast %52 : vector<8xf32> to vector<8x1xf32>
    %54 = tpu.reciprocal %53 {approx = true} : vector<8x1xf32> -> vector<8x1xf32>
    %55 = vector.broadcast %54 : vector<8x1xf32> to vector<8x8xf32>
    %56 = arith.mulf %51, %55 : vector<8x8xf32>
    %57 = arith.truncf %56 : vector<8x8xf32> to vector<8x8xbf16>
    %cst_17 = arith.constant dense<0.000000e+00> : vector<8x32xf32>
    %58 = tpu.matmul %57, %43, %cst_17 {dimension_numbers = #tpu.dot_dimension_numbers<[1], [0], [0], [1], [0, 0, 1, 1], [], []>} : vector<8x8xbf16>, vector<8x32xbf16>, vector<8x32xf32> -> vector<8x32xf32>
    %59 = vector.extract_strided_slice %7 {offsets = [0, 64], sizes = [8, 32], strides = [1, 1]} : vector<8x128xf32> to vector<8x32xf32>
    %60 = arith.truncf %59 : vector<8x32xf32> to vector<8x32xbf16>
    %61 = vector.extract_strided_slice %8 {offsets = [0, 64], sizes = [8, 32], strides = [1, 1]} : vector<8x128xf32> to vector<8x32xf32>
    %62 = arith.truncf %61 : vector<8x32xf32> to vector<8x32xbf16>
    %63 = vector.extract_strided_slice %9 {offsets = [0, 64], sizes = [8, 32], strides = [1, 1]} : vector<8x128xf32> to vector<8x32xf32>
    %64 = arith.truncf %63 : vector<8x32xf32> to vector<8x32xbf16>
    %cst_18 = arith.constant dense<0.000000e+00> : vector<8x8xf32>
    %65 = tpu.matmul %60, %62, %cst_18 {dimension_numbers = #tpu.dot_dimension_numbers<[1], [1], [0], [0], [0, 0, 1, 0], [], []>} : vector<8x32xbf16>, vector<8x32xbf16>, vector<8x8xf32> -> vector<8x8xf32>
    %66 = vector.broadcast %16 : vector<1x8xf32> to vector<8x8xf32>
    %67 = arith.addf %65, %66 : vector<8x8xf32>
    %cst_19 = arith.constant dense<0xFF800000> : vector<8xf32>
    %68 = vector.multi_reduction <maximumf>, %67, %cst_19 [1] : vector<8x8xf32> to vector<8xf32>
    %69 = vector.shape_cast %68 : vector<8xf32> to vector<8x1xf32>
    %70 = vector.broadcast %69 : vector<8x1xf32> to vector<8x8xf32>
    %71 = arith.subf %67, %70 : vector<8x8xf32>
    %72 = math.exp %71 : vector<8x8xf32>
    %cst_20 = arith.constant dense<0.000000e+00> : vector<8xf32>
    %73 = vector.multi_reduction <add>, %72, %cst_20 [1] : vector<8x8xf32> to vector<8xf32>
    %74 = vector.shape_cast %73 : vector<8xf32> to vector<8x1xf32>
    %75 = tpu.reciprocal %74 {approx = true} : vector<8x1xf32> -> vector<8x1xf32>
    %76 = vector.broadcast %75 : vector<8x1xf32> to vector<8x8xf32>
    %77 = arith.mulf %72, %76 : vector<8x8xf32>
    %78 = arith.truncf %77 : vector<8x8xf32> to vector<8x8xbf16>
    %cst_21 = arith.constant dense<0.000000e+00> : vector<8x32xf32>
    %79 = tpu.matmul %78, %64, %cst_21 {dimension_numbers = #tpu.dot_dimension_numbers<[1], [0], [0], [1], [0, 0, 1, 1], [], []>} : vector<8x8xbf16>, vector<8x32xbf16>, vector<8x32xf32> -> vector<8x32xf32>
    %80 = vector.extract_strided_slice %7 {offsets = [0, 96], sizes = [8, 32], strides = [1, 1]} : vector<8x128xf32> to vector<8x32xf32>
    %81 = arith.truncf %80 : vector<8x32xf32> to vector<8x32xbf16>
    %82 = vector.extract_strided_slice %8 {offsets = [0, 96], sizes = [8, 32], strides = [1, 1]} : vector<8x128xf32> to vector<8x32xf32>
    %83 = arith.truncf %82 : vector<8x32xf32> to vector<8x32xbf16>
    %84 = vector.extract_strided_slice %9 {offsets = [0, 96], sizes = [8, 32], strides = [1, 1]} : vector<8x128xf32> to vector<8x32xf32>
    %85 = arith.truncf %84 : vector<8x32xf32> to vector<8x32xbf16>
    %cst_22 = arith.constant dense<0.000000e+00> : vector<8x8xf32>
    %86 = tpu.matmul %81, %83, %cst_22 {dimension_numbers = #tpu.dot_dimension_numbers<[1], [1], [0], [0], [0, 0, 1, 0], [], []>} : vector<8x32xbf16>, vector<8x32xbf16>, vector<8x8xf32> -> vector<8x8xf32>
    %87 = vector.broadcast %16 : vector<1x8xf32> to vector<8x8xf32>
    %88 = arith.addf %86, %87 : vector<8x8xf32>
    %cst_23 = arith.constant dense<0xFF800000> : vector<8xf32>
    %89 = vector.multi_reduction <maximumf>, %88, %cst_23 [1] : vector<8x8xf32> to vector<8xf32>
    %90 = vector.shape_cast %89 : vector<8xf32> to vector<8x1xf32>
    %91 = vector.broadcast %90 : vector<8x1xf32> to vector<8x8xf32>
    %92 = arith.subf %88, %91 : vector<8x8xf32>
    %93 = math.exp %92 : vector<8x8xf32>
    %cst_24 = arith.constant dense<0.000000e+00> : vector<8xf32>
    %94 = vector.multi_reduction <add>, %93, %cst_24 [1] : vector<8x8xf32> to vector<8xf32>
    %95 = vector.shape_cast %94 : vector<8xf32> to vector<8x1xf32>
    %96 = tpu.reciprocal %95 {approx = true} : vector<8x1xf32> -> vector<8x1xf32>
    %97 = vector.broadcast %96 : vector<8x1xf32> to vector<8x8xf32>
    %98 = arith.mulf %93, %97 : vector<8x8xf32>
    %99 = arith.truncf %98 : vector<8x8xf32> to vector<8x8xbf16>
    %cst_25 = arith.constant dense<0.000000e+00> : vector<8x32xf32>
    %100 = tpu.matmul %99, %85, %cst_25 {dimension_numbers = #tpu.dot_dimension_numbers<[1], [0], [0], [1], [0, 0, 1, 1], [], []>} : vector<8x8xbf16>, vector<8x32xbf16>, vector<8x32xf32> -> vector<8x32xf32>
    %101 = tpu.concatenate %37, %58, %79, %100 in 1 : vector<8x32xf32>, vector<8x32xf32>, vector<8x32xf32>, vector<8x32xf32> -> vector<8x128xf32>
    %102 = arith.truncf %101 : vector<8x128xf32> to vector<8x128xbf16>
    %c0_26 = arith.constant 0 : index
    %c0_27 = arith.constant 0 : index
    %103 = vector.load %arg4[%c0_26, %c0_27] : memref<128x128xbf16, #tpu.memory_space<vmem>>, vector<128x128xbf16>
    %cst_28 = arith.constant dense<0.000000e+00> : vector<8x128xf32>
    %104 = tpu.matmul %102, %103, %cst_28 {dimension_numbers = #tpu.dot_dimension_numbers<[1], [0], [0], [1], [0, 0, 1, 1], [], []>} : vector<8x128xbf16>, vector<128x128xbf16>, vector<8x128xf32> -> vector<8x128xf32>
    %105 = arith.addf %104, %1 : vector<8x128xf32>
    %cst_29 = arith.constant dense<0.000000e+00> : vector<8xf32>
    %106 = vector.multi_reduction <add>, %105, %cst_29 [1] : vector<8x128xf32> to vector<8xf32>
    %107 = vector.shape_cast %106 : vector<8xf32> to vector<8x1xf32>
    %cst_30 = arith.constant 1.280000e+02 : f32
    %108 = vector.broadcast %cst_30 : f32 to vector<8x1xf32>
    %109 = arith.divf %107, %108 : vector<8x1xf32>
    %110 = vector.broadcast %109 : vector<8x1xf32> to vector<8x128xf32>
    %111 = arith.subf %105, %110 : vector<8x128xf32>
    %112 = arith.mulf %111, %111 : vector<8x128xf32>
    %cst_31 = arith.constant dense<0.000000e+00> : vector<8xf32>
    %113 = vector.multi_reduction <add>, %112, %cst_31 [1] : vector<8x128xf32> to vector<8xf32>
    %114 = vector.shape_cast %113 : vector<8xf32> to vector<8x1xf32>
    %cst_32 = arith.constant 1.280000e+02 : f32
    %115 = vector.broadcast %cst_32 : f32 to vector<8x1xf32>
    %116 = arith.divf %114, %115 : vector<8x1xf32>
    %117 = vector.broadcast %109 : vector<8x1xf32> to vector<8x128xf32>
    %118 = arith.subf %105, %117 : vector<8x128xf32>
    %cst_33 = arith.constant 9.99999974E-6 : f32
    %119 = vector.broadcast %cst_33 : f32 to vector<8x1xf32>
    %120 = arith.addf %116, %119 : vector<8x1xf32>
    %121 = math.rsqrt %120 : vector<8x1xf32>
    %122 = vector.broadcast %121 : vector<8x1xf32> to vector<8x128xf32>
    %123 = arith.mulf %118, %122 : vector<8x128xf32>
    %c0_34 = arith.constant 0 : index
    %c0_35 = arith.constant 0 : index
    %124 = vector.load %arg5[%c0_34, %c0_35] : memref<1x128xf32, #tpu.memory_space<vmem>>, vector<1x128xf32>
    %125 = vector.broadcast %124 : vector<1x128xf32> to vector<8x128xf32>
    %126 = arith.mulf %123, %125 : vector<8x128xf32>
    %c0_36 = arith.constant 0 : index
    %c0_37 = arith.constant 0 : index
    %127 = vector.load %arg6[%c0_36, %c0_37] : memref<1x128xf32, #tpu.memory_space<vmem>>, vector<1x128xf32>
    %128 = vector.broadcast %127 : vector<1x128xf32> to vector<8x128xf32>
    %129 = arith.addf %126, %128 : vector<8x128xf32>
    %130 = arith.truncf %129 : vector<8x128xf32> to vector<8x128xbf16>
    %c0_38 = arith.constant 0 : index
    %c0_39 = arith.constant 0 : index
    %131 = vector.load %arg7[%c0_38, %c0_39] : memref<128x512xbf16, #tpu.memory_space<vmem>>, vector<128x512xbf16>
    %cst_40 = arith.constant dense<0.000000e+00> : vector<8x512xf32>
    %132 = tpu.matmul %130, %131, %cst_40 {dimension_numbers = #tpu.dot_dimension_numbers<[1], [0], [0], [1], [0, 0, 1, 1], [], []>} : vector<8x128xbf16>, vector<128x512xbf16>, vector<8x512xf32> -> vector<8x512xf32>
    %c0_41 = arith.constant 0 : index
    %c0_42 = arith.constant 0 : index
    %133 = vector.load %arg8[%c0_41, %c0_42] : memref<1x512xf32, #tpu.memory_space<vmem>>, vector<1x512xf32>
    %134 = vector.broadcast %133 : vector<1x512xf32> to vector<8x512xf32>
    %135 = arith.addf %132, %134 : vector<8x512xf32>
    %cst_43 = arith.constant 0.000000e+00 : f32
    %136 = vector.broadcast %cst_43 : f32 to vector<8x512xf32>
    %137 = arith.maximumf %135, %136 : vector<8x512xf32>
    %138 = arith.truncf %137 : vector<8x512xf32> to vector<8x512xbf16>
    %c0_44 = arith.constant 0 : index
    %c0_45 = arith.constant 0 : index
    %139 = vector.load %arg9[%c0_44, %c0_45] : memref<512x128xbf16, #tpu.memory_space<vmem>>, vector<512x128xbf16>
    %cst_46 = arith.constant dense<0.000000e+00> : vector<8x128xf32>
    %140 = tpu.matmul %138, %139, %cst_46 {dimension_numbers = #tpu.dot_dimension_numbers<[1], [0], [0], [1], [0, 0, 1, 1], [], []>} : vector<8x512xbf16>, vector<512x128xbf16>, vector<8x128xf32> -> vector<8x128xf32>
    %c0_47 = arith.constant 0 : index
    %c0_48 = arith.constant 0 : index
    %141 = vector.load %arg10[%c0_47, %c0_48] : memref<1x128xf32, #tpu.memory_space<vmem>>, vector<1x128xf32>
    %142 = vector.broadcast %141 : vector<1x128xf32> to vector<8x128xf32>
    %143 = arith.addf %140, %142 : vector<8x128xf32>
    %144 = arith.addf %143, %129 : vector<8x128xf32>
    %cst_49 = arith.constant dense<0.000000e+00> : vector<8xf32>
    %145 = vector.multi_reduction <add>, %144, %cst_49 [1] : vector<8x128xf32> to vector<8xf32>
    %146 = vector.shape_cast %145 : vector<8xf32> to vector<8x1xf32>
    %cst_50 = arith.constant 1.280000e+02 : f32
    %147 = vector.broadcast %cst_50 : f32 to vector<8x1xf32>
    %148 = arith.divf %146, %147 : vector<8x1xf32>
    %149 = vector.broadcast %148 : vector<8x1xf32> to vector<8x128xf32>
    %150 = arith.subf %144, %149 : vector<8x128xf32>
    %151 = arith.mulf %150, %150 : vector<8x128xf32>
    %cst_51 = arith.constant dense<0.000000e+00> : vector<8xf32>
    %152 = vector.multi_reduction <add>, %151, %cst_51 [1] : vector<8x128xf32> to vector<8xf32>
    %153 = vector.shape_cast %152 : vector<8xf32> to vector<8x1xf32>
    %cst_52 = arith.constant 1.280000e+02 : f32
    %154 = vector.broadcast %cst_52 : f32 to vector<8x1xf32>
    %155 = arith.divf %153, %154 : vector<8x1xf32>
    %156 = vector.broadcast %148 : vector<8x1xf32> to vector<8x128xf32>
    %157 = arith.subf %144, %156 : vector<8x128xf32>
    %cst_53 = arith.constant 9.99999974E-6 : f32
    %158 = vector.broadcast %cst_53 : f32 to vector<8x1xf32>
    %159 = arith.addf %155, %158 : vector<8x1xf32>
    %160 = math.rsqrt %159 : vector<8x1xf32>
    %161 = vector.broadcast %160 : vector<8x1xf32> to vector<8x128xf32>
    %162 = arith.mulf %157, %161 : vector<8x128xf32>
    %c0_54 = arith.constant 0 : index
    %c0_55 = arith.constant 0 : index
    %163 = vector.load %arg11[%c0_54, %c0_55] : memref<1x128xf32, #tpu.memory_space<vmem>>, vector<1x128xf32>
    %164 = vector.broadcast %163 : vector<1x128xf32> to vector<8x128xf32>
    %165 = arith.mulf %162, %164 : vector<8x128xf32>
    %c0_56 = arith.constant 0 : index
    %c0_57 = arith.constant 0 : index
    %166 = vector.load %arg12[%c0_56, %c0_57] : memref<1x128xf32, #tpu.memory_space<vmem>>, vector<1x128xf32>
    %167 = vector.broadcast %166 : vector<1x128xf32> to vector<8x128xf32>
    %168 = arith.addf %165, %167 : vector<8x128xf32>
    %c0_58 = arith.constant 0 : index
    %c0_59 = arith.constant 0 : index
    %c0_60 = arith.constant 0 : index
    %169 = vector.load %arg13[%c0_58, %c0_59, %c0_60] : memref<1x8x128xf32, #tpu.memory_space<vmem>>, vector<1x8x128xf32>
    %170 = vector.shape_cast %169 : vector<1x8x128xf32> to vector<8x128xf32>
    %171 = vector.shape_cast %168 : vector<8x128xf32> to vector<1x8x128xf32>
    tpu.vector_store %arg13[%c0_58, %c0_59, %c0_60], %171 {strides = array<i32>} : memref<1x8x128xf32, #tpu.memory_space<vmem>>, vector<1x8x128xf32>,
    return
  }
  func.func @transform_0(%arg0: i32) -> (i32, i32, i32) {
    %c0_i32 = arith.constant 0 : i32
    %c0_i32_0 = arith.constant 0 : i32
    %c0_i32_1 = arith.constant 0 : i32
    return %arg0, %c0_i32, %c0_i32_0 : i32, i32, i32
  }
  func.func @transform_1(%arg0: i32) -> (i32, i32, i32) {
    %c0_i32 = arith.constant 0 : i32
    %c0_i32_0 = arith.constant 0 : i32
    %c0_i32_1 = arith.constant 0 : i32
    return %arg0, %c0_i32, %c0_i32_0 : i32, i32, i32
  }
  func.func @transform_2(%arg0: i32) -> (i32, i32) {
    %c0_i32 = arith.constant 0 : i32
    %c0_i32_0 = arith.constant 0 : i32
    %c0_i32_1 = arith.constant 0 : i32
    return %c0_i32, %c0_i32_0 : i32, i32
  }
  func.func @transform_3(%arg0: i32) -> (i32, i32) {
    %c0_i32 = arith.constant 0 : i32
    %c0_i32_0 = arith.constant 0 : i32
    %c0_i32_1 = arith.constant 0 : i32
    return %c0_i32, %c0_i32_0 : i32, i32
  }
  func.func @transform_4(%arg0: i32) -> (i32, i32) {
    %c0_i32 = arith.constant 0 : i32
    %c0_i32_0 = arith.constant 0 : i32
    %c0_i32_1 = arith.constant 0 : i32
    return %c0_i32, %c0_i32_0 : i32, i32
  }
  func.func @transform_5(%arg0: i32) -> (i32, i32) {
    %c0_i32 = arith.constant 0 : i32
    %c0_i32_0 = arith.constant 0 : i32
    %c0_i32_1 = arith.constant 0 : i32
    return %c0_i32, %c0_i32_0 : i32, i32
  }
  func.func @transform_6(%arg0: i32) -> (i32, i32) {
    %c0_i32 = arith.constant 0 : i32
    %c0_i32_0 = arith.constant 0 : i32
    %c0_i32_1 = arith.constant 0 : i32
    return %c0_i32, %c0_i32_0 : i32, i32
  }
  func.func @transform_7(%arg0: i32) -> (i32, i32) {
    %c0_i32 = arith.constant 0 : i32
    %c0_i32_0 = arith.constant 0 : i32
    %c0_i32_1 = arith.constant 0 : i32
    return %c0_i32, %c0_i32_0 : i32, i32
  }
  func.func @transform_8(%arg0: i32) -> (i32, i32) {
    %c0_i32 = arith.constant 0 : i32
    %c0_i32_0 = arith.constant 0 : i32
    %c0_i32_1 = arith.constant 0 : i32
    return %c0_i32, %c0_i32_0 : i32, i32
  }
  func.func @transform_9(%arg0: i32) -> (i32, i32) {
    %c0_i32 = arith.constant 0 : i32
    %c0_i32_0 = arith.constant 0 : i32
    %c0_i32_1 = arith.constant 0 : i32
    return %c0_i32, %c0_i32_0 : i32, i32
  }
  func.func @transform_10(%arg0: i32) -> (i32, i32) {
    %c0_i32 = arith.constant 0 : i32
    %c0_i32_0 = arith.constant 0 : i32
    %c0_i32_1 = arith.constant 0 : i32
    return %c0_i32, %c0_i32_0 : i32, i32
  }
  func.func @transform_11(%arg0: i32) -> (i32, i32) {
    %c0_i32 = arith.constant 0 : i32
    %c0_i32_0 = arith.constant 0 : i32
    %c0_i32_1 = arith.constant 0 : i32
    return %c0_i32, %c0_i32_0 : i32, i32
  }
  func.func @transform_12(%arg0: i32) -> (i32, i32, i32) {
    %c0_i32 = arith.constant 0 : i32
    %c0_i32_0 = arith.constant 0 : i32
    %c0_i32_1 = arith.constant 0 : i32
    return %arg0, %c0_i32, %c0_i32_0 : i32, i32, i32
  }
}

</mosaic_0001>

<bundles_post_ra>
// kernel: tpu_custom_call.1
= control target key start
LH: loop header
LB: loop body
LE: loop exit
PB: predicated region body
PF: predicated region fallthrough
CT: control target
= control target key end

     0   :  { %s3453_s0 = inlined_call_operand.hbm [shape: f32[2,8,128], index: 0, kind: input, shape index: {}]   ;;  %s3454_s1 = inlined_call_operand.hbm [shape: s32[2,1,8], index: 1, kind: input, shape index: {}]   ;;  %s3455_s2 = inlined_call_operand.hbm [shape: bf16[128,384], index: 2, kind: input, shape index: {}]   ;;  %s3456_s3 = inlined_call_operand.hbm [shape: bf16[128,128], index: 3, kind: input, shape index: {}]   ;;  %s3457_s4 = inlined_call_operand.vmem [shape: f32[1,128], index: 4, kind: input, shape index: {}]   ;;  %s3458_s5 = inlined_call_operand.vmem [shape: f32[1,128], index: 5, kind: input, shape index: {}]   ;;  %s3459_s6 = inlined_call_operand.hbm [shape: bf16[128,512], index: 6, kind: input, shape index: {}]   ;;  %s3460_s7 = inlined_call_operand.vmem [shape: f32[1,512], index: 7, kind: input, shape index: {}]   ;;  %s3461_s8 = inlined_call_operand.hbm [shape: bf16[512,128], index: 8, kind: input, shape index: {}]   ;;  %s3462_s9 = inlined_call_operand.vmem [shape: f32[1,128], index: 9, kind: input, shape index: {}]   ;;  %s3463_s10 = inlined_call_operand.vmem [shape: f32[1,128], index: 10, kind: input, shape index: {}]   ;;  %s3464_s11 = inlined_call_operand.vmem [shape: f32[1,128], index: 11, kind: input, shape index: {}]   ;;  %s3465_s12 = inlined_call_operand.hbm [shape: f32[2,8,128], index: 12, kind: output, shape index: {}]  }
   0x1   :  { %3474 = sst [smem:[#allocation24_spill]] %s3453_s0 }
   0x2   :  { %3475 = sst [smem:[#allocation25_spill]] %s3455_s2 }
   0x3   :  { %3476 = sst [smem:[#allocation26_spill]] %s3456_s3 }
   0x4   :  { %3477 = sst [smem:[#allocation27_spill]] %s3459_s6 }
   0x5   :  { %3478 = sst [smem:[#allocation28_spill]] %s3461_s8 }
   0x6   :  { %17 = vsyncpa [#allocation3], 0 }
   0x7   :  { %19 = vsyncpa [#allocation3 + $0x1], 0 }
   0x8   :  { %20 = vsyncpa [#allocation6], 0 }
   0x9   :  { %22 = vsyncpa [#allocation6 + $0x1], 0 }
   0xa   :  { %23 = vsyncpa [#allocation9], 0 }
   0xb   :  { %24 = vsyncpa [#allocation12], 0 }
   0xc   :  { %25 = vsyncpa [#allocation4], 0 }
   0xd   :  { %27 = vsyncpa [#allocation4 + $0x1], 0  ;;  %s3053_s21 = smov 0   ;;  %s3055_s22 = smov 0  }
   0xe   :  { %s3057_s23 = smov 0   ;;  %s3059_s24 = smov 0  }
   0xf LB: > { %3479 = sst [smem:[#allocation20_spill]] %s2963_s23  ;;  %s2969_s25 = smov [#allocation7]   ;;  %s2967_s24 = sphi %s3059_s24, %s3508_s24   ;;  %s2963_s23 = sphi %s3057_s23, %s3510_s23   ;;  %s2959_s22 = sphi %s3055_s22, %s3512_s22   ;;  %s2955_s21 = sphi %s3053_s21, %s3511_s21  }
  0x10   : > { %s338_s26 = sshll.u32 %s2969_s25, 4  ;;  %s3074_s27 = sadd.s32 4294967295, %s2967_s24   ;;  %s339_s26 = int_to_ptr.vmem [resolvable:$true] %s338_s26 }
  0x11   : > { %p2188_p0 = scmp.ge.s32.totalorder %s2967_s24, 1  ;;  %p3467_p1 = scmp.eq.s32.totalorder %s3074_s27, 0 }
  0x12   : > { %p326_p2 = scmp.lt.s32.totalorder %s2967_s24, 3  ;;  %s2970_s29 = smov [#allocation8]  }
  0x13   : > { %s351_s30 = sshll.u32 %s2970_s29, 4  ;;  %s2971_s14 = smov [#allocation10]   ;;  %s3092_s30 = int_to_ptr.vmem [resolvable:$true] %s351_s30 }
  0x14   : > { %p3079_p3 = pnand %p2188_p0, %p326_p2  ;;  %s3094_s15 = sshll.u32 %s2971_s14, 4  ;;  %s371_s15 = int_to_ptr.vmem [resolvable:$true] %s3094_s15 }
  0x15   : > { %s2738_s16 = scalar_lea.vmem %s339_s26, 3072  ;;  %p2746_p11 = scmp.lt.s32.totalorder %s339_s26, %s339_s26 }
  0x16   : > { %s3480_s28 = scalar_select %p3079_p3, 1, 0 }
  0x17   : > { %p2505_p5 = pneg %p3079_p3  ;;  %p2739_p8 = scmp.ne.s32.totalorder %s339_s26, %s2738_s16 }
  0x18   : > { %p2747_p12 = scmp.lt.s32.totalorder %s2738_s16, %s2738_s16 }
  0x19   : > { %p3088_p6 = pnand %p2505_p5, %p3467_p1 }
  0x1a   : > { %p2748_p13 = por %p2747_p12, %p2746_p11 }
  0x1b   : > { %p2729_p7 = pneg %p3088_p6 }
  0x1d   : > { %p2741_p9 = pnand %p2739_p8, %p2729_p7 }
  0x1f   : > { %p2742_p10 = pneg %p2741_p9 }
  0x21   : > { %p2749_p0 = pnand %p2748_p13, %p2742_p10 }
  0x23   : > { %2752 = shalt.err (!%p2749_p0)
}
  0x24   : > { %s2972_s17 = smov 192   ;;  %s2973_s18 = smov 12  }
  0x25   : > { %s3482_s2 = sld [smem:[#allocation25_spill]]  ;;  %s2764_s25 = scalar_lea.vmem %s3092_s30, 1024 }
  0x26   : > { %p2765_p2 = scmp.ne.s32.totalorder %s3092_s30, %s2764_s25  ;;  %p2772_p9 = scmp.lt.s32.totalorder %s3092_s30, %s3092_s30 }
  0x27   : > { %p2773_p10 = scmp.lt.s32.totalorder %s2764_s25, %s2764_s25 }
  0x28   : > { %p2767_p5 = pnand %p2765_p2, %p2729_p7 }
  0x29   : > { %p2774_p11 = por %p2773_p10, %p2772_p9 }
  0x2a   : > { %p2768_p8 = pneg %p2767_p5 }
  0x2b   : > { %2508 = dma.hbm_to_vmem [thread:$0]  (!%p3088_p6), %s3482_s2, 3072, %s339_s26, [#allocation6], %s2972_s17, %s2972_s17, %s2973_s18  }
  0x2c   : > { %p2775_p12 = pnand %p2774_p11, %p2768_p8 }
  0x2e   : > { %2778 = shalt.err (!%p2775_p12)
}
  0x2f   : > { %s2974_s29 = smov 64   ;;  %s2975_s14 = smov 4  }
  0x30   : > { %s3483_s3 = sld [smem:[#allocation26_spill]]  ;;  %s2790_s17 = scalar_lea.vmem %s371_s15, 4096 }
  0x31   : > { %p2791_p13 = scmp.ne.s32.totalorder %s371_s15, %s2790_s17  ;;  %p2798_p5 = scmp.lt.s32.totalorder %s371_s15, %s371_s15 }
  0x32   : > { %p2799_p8 = scmp.lt.s32.totalorder %s2790_s17, %s2790_s17 }
  0x33   : > { %p2793_p0 = pnand %p2791_p13, %p2729_p7 }
  0x34   : > { %p2800_p9 = por %p2799_p8, %p2798_p5 }
  0x35   : > { %p2794_p2 = pneg %p2793_p0 }
  0x36   : > { %2511 = dma.hbm_to_vmem [thread:$0]  (!%p3088_p6), %s3483_s3, 1024, %s3092_s30, [#allocation9], %s2974_s29, %s2974_s29, %s2975_s14  }
  0x37   : > { %p2801_p10 = pnand %p2800_p9, %p2794_p2 }
  0x39   : > { %2804 = shalt.err (!%p2801_p10)
}
  0x3a   : > { %s2976_s18 = smov 256   ;;  %s2977_s19 = smov 16  }
  0x3b   : > { %s3484_s6 = sld [smem:[#allocation27_spill]]  ;;  %s2978_s30 = smov [#allocation11]  }
  0x3c   : > { %s386_s26 = sshll.u32 %s2978_s30, 4  ;;  %s387_s26 = int_to_ptr.vmem [resolvable:$true] %s386_s26 }
  0x3d   : > { %s2816_s16 = scalar_lea.vmem %s387_s26, 4096  ;;  %p2824_p0 = scmp.lt.s32.totalorder %s387_s26, %s387_s26 }
  0x3e   : > { %p2817_p11 = scmp.ne.s32.totalorder %s387_s26, %s2816_s16  ;;  %p2825_p2 = scmp.lt.s32.totalorder %s2816_s16, %s2816_s16 }
  0x40   : > { %p2819_p12 = pnand %p2817_p11, %p2729_p7  ;;  %p2826_p5 = por %p2825_p2, %p2824_p0 }
  0x41   : > { %2514 = dma.hbm_to_vmem [thread:$0]  (!%p3088_p6), %s3484_s6, 4096, %s371_s15, [#allocation9], %s2976_s18, %s2976_s18, %s2977_s19  }
  0x42   : > { %p2820_p13 = pneg %p2819_p12 }
  0x44   : > { %p2827_p8 = pnand %p2826_p5, %p2820_p13 }
  0x46   : > { %2830 = shalt.err (!%p2827_p8)
}
  0x47   : > { %s3485_s8 = sld [smem:[#allocation28_spill]]  ;;  %s2187_s13 = sadd.s32 4294967294, %s2967_s24  }
  0x48   : > { %s3144_s18 = sadd.s32 1, %s2967_s24   ;;  %s40_s20 = sadd.s32 1, %s2963_s23 }
  0x49   : > { %3486 = sst [smem:[#allocation21_spill]] %s3144_s18  ;;  %s37_s19 = ssub.s32 %s2967_s24, %s3144_s18 }
  0x4a   : > { %p38_p7 = scmp.eq.s32.totalorder %s37_s19, 0  ;;  %p47_p9 = scmp.ne.s32.totalorder %s2963_s23, %s2959_s22 }
  0x4b   : > { %p48_p10 = scmp.eq.s32.totalorder %s2967_s24, 0  ;;  %p53_p11 = scmp.ne.s32.totalorder %s2959_s22, %s2955_s21 }
  0x4c   : > { %s3155_s25 = scalar_select %p38_p7, %s2963_s23, %s40_s20  }
  0x4d   : > { %2517 = dma.hbm_to_vmem [thread:$0]  (!%p3088_p6), %s3485_s8, 4096, %s387_s26, [#allocation12], %s2974_s29, %s2974_s29, %s2975_s14  }
  0x4e   : > { %3487 = sst [smem:[#allocation22_spill]] %s3155_s25  ;;  %p3157_p12 = por %p48_p10, %p47_p9 }
  0x4f   : > { %p3163_p6 = por %p3467_p1, %p53_p11  ;;  %p313_p13 = scmp.eq.s32.totalorder %s3074_s27, 1 }
  0x50   : > { %p319_p0 = scmp.eq.s32.totalorder %s2187_s13, 1  ;;  %p2533_p2 = scmp.lt.s32.totalorder %s2967_s24, 2 }
  0x51   : > { %s3489_s29 = scalar_select %p3163_p6, 1, 0 }
  0x52   : > { %s3170_s14 = sand.u32 1, %s2963_s23   ;;  %p3172_p5 = por %p313_p13, %p47_p9 }
  0x53   : > { %p3176_p8 = por %p319_p0, %p53_p11  ;;  %s2194_s15 = sshll.u32 %s3170_s14, 3 }
  0x54   : > { %s3490_s26 = scalar_select %p3172_p5, 1, 0 }
  0x55   : > { %s3491_s16 = scalar_select %p3176_p8, 1, 0 }
  0x56   : > { %s2195_s17 = sshll.u32 %s2967_s24, 7  ;;  %s3493_s0 = sld [smem:[#allocation24_spill]] }
  0x57   : > { %3492 = sst [smem:[#allocation23_spill]] %s3491_s16  ;;  %s413_s13 = scalar_lea.vmem [#allocation2], %s2194_s15 }
  0x58   : > { %s420_s3 = sshll.u32 %s413_s13, 4  ;;  %p3191_p7 = pnand %p2533_p2, %p3157_p12  ;;  %s3187_s3 = int_to_ptr.vmem [resolvable:$true] %s420_s3 }
  0x59   : > { %s410_s25 = scalar_lea.sflag [#allocation3], %s3170_s14 }
  0x5a   : > { %p2833_p10 = pneg %p3191_p7 }
  0x5c   : > { %s3185_s2 = scalar_lea.hbm %s3493_s0, %s2195_s17  ;;  %s2836_s30 = scalar_lea.hbm %s3493_s0, 256 }
  0x5d   : > { %s2831_s23 = scalar_lea.hbm %s3185_s2, 128  ;;  %p2837_p12 = scmp.lt.s32.totalorder %s3185_s2, %s3493_s0 }
  0x5e   : > { %p2832_p9 = scmp.ne.s32.totalorder %s3185_s2, %s2831_s23  ;;  %p2838_p0 = scmp.lt.s32.totalorder %s2836_s30, %s2831_s23 }
  0x60   : > { %p2834_p11 = pnand %p2833_p10, %p2832_p9  ;;  %p2839_p2 = por %p2838_p0, %p2837_p12 }
  0x62   : > { %p2835_p13 = pneg %p2834_p11 }
  0x64   : > { %p2840_p4 = pnand %p2839_p2, %p2835_p13 }
  0x66   : > { %2843 = shalt.err (!%p2840_p4)
}
  0x67   : > { %s2844_s13 = scalar_lea.vmem %s3187_s3, 128  ;;  %s2979_s15 = smov [#allocation2]  }
  0x68   : > { %p2845_p1 = scmp.ne.s32.totalorder %s3187_s3, %s2844_s13  ;;  %s2849_s17 = sshll.u32 %s2979_s15, 4  ;;  %s2850_s17 = int_to_ptr.vmem [resolvable:$false] %s2849_s17 }
  0x69   : > { %s2851_s8 = scalar_lea.vmem %s2850_s17, 256  ;;  %p2852_p8 = scmp.lt.s32.totalorder %s3187_s3, %s2850_s17 }
  0x6a   : > { %p2847_p9 = pnand %p2845_p1, %p2833_p10  ;;  %p2853_p5 = scmp.lt.s32.totalorder %s2851_s8, %s2844_s13 }
  0x6c   : > { %p2848_p11 = pneg %p2847_p9  ;;  %p2854_p6 = por %p2853_p5, %p2852_p8 }
  0x6e   : > { %p2855_p12 = pnand %p2854_p6, %p2848_p11 }
  0x70   : > { %2858 = shalt.err (!%p2855_p12)
}
  0x71   : > { %2521 = dma.hbm_to_vmem [thread:$0]  (!%p3191_p7), %s3185_s2, 128, %s3187_s3, %s410_s25  }
  0x72   : > { %s2196_s23 = sshll.u32 %s2967_s24, 4  ;;  %s430_s30 = scalar_lea.vmem [#allocation5], %s3170_s14 }
  0x73   : > { %s437_s19 = sshll.u32 %s430_s30, 4  ;;  %s435_s17 = scalar_lea.hbm %s3454_s1, %s2196_s23  ;;  %s438_s19 = int_to_ptr.vmem [resolvable:$true] %s437_s19 }
  0x74   : > { %s3495_s8 = sand.u32 1, %s2967_s24   ;;  %s2859_s0 = scalar_lea.hbm %s435_s17, 16 }
  0x75   : > { %s428_s13 = scalar_lea.sflag [#allocation6], %s3495_s8  ;;  %p2860_p1 = scmp.ne.s32.totalorder %s435_s17, %s2859_s0 }
  0x76   : > { %s2864_s2 = scalar_lea.hbm %s3454_s1, 32  ;;  %p2865_p5 = scmp.lt.s32.totalorder %s435_s17, %s3454_s1 }
  0x77   : > { %p2862_p4 = pnand %p2860_p1, %p2833_p10  ;;  %p2866_p8 = scmp.lt.s32.totalorder %s2864_s2, %s2859_s0 }
  0x79   : > { %p2863_p6 = pneg %p2862_p4  ;;  %p2867_p13 = por %p2866_p8, %p2865_p5 }
  0x7b   : > { %p2868_p0 = pnand %p2867_p13, %p2863_p6 }
  0x7d   : > { %2871 = shalt.err (!%p2868_p0)
}
  0x7e   : > { %s2872_s14 = scalar_lea.vmem %s438_s19, 16  ;;  %s2980_s23 = smov [#allocation5]  }
  0x7f   : > { %p2873_p2 = scmp.ne.s32.totalorder %s438_s19, %s2872_s14  ;;  %s2877_s30 = sshll.u32 %s2980_s23, 4  ;;  %s2878_s30 = int_to_ptr.vmem [resolvable:$false] %s2877_s30 }
  0x80   : > { %s2879_s18 = scalar_lea.vmem %s2878_s30, 32  ;;  %p2880_p12 = scmp.lt.s32.totalorder %s438_s19, %s2878_s30 }
  0x81   : > { %p2875_p9 = pnand %p2873_p2, %p2833_p10  ;;  %p2881_p1 = scmp.lt.s32.totalorder %s2879_s18, %s2872_s14 }
  0x83   : > { %p2876_p11 = pneg %p2875_p9  ;;  %p2882_p4 = por %p2881_p1, %p2880_p12 }
  0x85   : > { %p2883_p3 = pnand %p2882_p4, %p2876_p11 }
  0x87   : > { %2886 = shalt.err (!%p2883_p3)
}
  0x88   : > { %2524 = dma.hbm_to_vmem [thread:$0]  (!%p3191_p7), %s435_s17, 16, %s438_s19, %s428_s13  }
  0x89   : > { %p3496_p6 = scmp.ne.s32.totalorder %s3480_s28, 0 }
  0x8a   : > { %s3245_s0 = sand.u32 (!%p3496_p6), 1, %s2959_s22   ;;  %p3497_p10 = scmp.ne.s32.totalorder (!%p3496_p6), %s3489_s29, 0 }
  0x8b   : > { %446 = sbr.rel (%p3496_p6) target bundleno = 2984 (0xba8), region = 68  ;;  %s2198_s16 = sshll.u32 (!%p3496_p6), %s3245_s0, 3 }
  0x8c   : > { %s449_s20 = scalar_lea.sflag (!%p3496_p6), [#allocation3], %s3245_s0  ;;  %s3251_s15 = scalar_lea.vmem (!%p3496_p6), [#allocation2], %s2198_s16 }
  0x90   : > { %2930 = dma.done.wait (%p3497_p10), %s449_s20, 128  }
  0x91   : > { %2932 = vsyncadd (%p3497_p10), %s449_s20, 4294967168  ;;  %s457_s6 = sand.u32 1, %s3074_s27   ;;  %s460_s19 = scalar_lea.vmem [#allocation5], %s3245_s0 }
  0x92   : > { %s458_s28 = scalar_lea.sflag [#allocation6], %s457_s6 }
  0x93   : > { %2934 = dma.done.wait (%p3497_p10), %s458_s28, 16  }
  0x94   : > { %2936 = vsyncadd (%p3497_p10), %s458_s28, 4294967280  ;;  %p3498_p3 = scmp.eq.s32.totalorder %s3074_s27, 0 }
  0x96   : > { %2938 = dma.done.wait (%p3498_p3), [#allocation6], 3072   ;;  %p3499_p7 = pmov %p3498_p3 }
  0x97   : > { %p3500_p5 = pmov %p3498_p3 }
  0x98   : > { %2940 = vsyncadd (%p3499_p7), [#allocation6], 4294964224 }
  0x99   : > { %2942 = dma.done.wait (%p3500_p5), [#allocation9], 5120   ;;  %p3501_p8 = pmov %p3498_p3 }
  0x9a   : > { %p3502_p13 = pmov %p3498_p3 }
  0x9b   : > { %2944 = vsyncadd (%p3501_p8), [#allocation9], 4294962176 }
  0x9c   : > { %2946 = dma.done.wait (%p3502_p13), [#allocation12], 4096   ;;  %p3503_p0 = pmov %p3498_p3 }
  0x9d   : > { %v2981_v0 = vmov 0   ;;  %v2982_v1 = vmov 0.0   ;;  %vm2983_vm0 = vmmov 0   ;;  %v2587_v2 = vld [vmem:[#allocation7 + $0xac] ss:$12 sps:$4 sm:$0xff]   ;;  %vm778_vm1 = vcmask 261120  }
  0x9e   : > { %2948 = vsyncadd (%p3503_p0), [#allocation12], 4294963200  ;;  %716 = vmatprep.mubr.bf16.mxu0 %v2981_v0  ;;  %2395 = vmatprep.subr.bf16.mxu1 %v2982_v1  ;;  %v2589_v3 = vld [vmem:[#allocation7 + $0xa8] ss:$12 sps:$4 sm:$0xff]   ;;  %v2592_v5 = vld [vmem:[#allocation7 + $0x90] ss:$12 sps:$4 sm:$0xff]   ;;  %v773_v42 = vlaneseq }
  0x9f   : > { %2411 = vmatprep.mubr.msk.bf16.mxu1 %vm2983_vm0, %v2982_v1  ;;  %684 = vmatprep.subr.bf16.mxu0 %v2587_v2  ;;  %v2590_v4 = vld [vmem:[#allocation7 + $0x94] ss:$12 sps:$4 sm:$0xff]   ;;  %v2593_v6 = vld [vmem:[#allocation7 + $0x7c] ss:$12 sps:$4 sm:$0xff]   ;;  %v2595_v7 = vld [vmem:[#allocation7 + $0x78] ss:$12 sps:$4 sm:$0xff]  }
  0xa0   : > { %685 = vmatpush1.bf16.msra.mxu0 %v2589_v3  ;;  %v2596_v8 = vld [vmem:[#allocation7 + $0x64] ss:$12 sps:$4 sm:$0xff]   ;;  %v2598_v9 = vld [vmem:[#allocation7 + $0x60] ss:$12 sps:$4 sm:$0xff]   ;;  %v2601_v13 = vld [vmem:[#allocation7 + $0x48] ss:$12 sps:$4 sm:$0xff]  }
  0xa1   : > { %686 = vmatprep.subr.bf16.mxu0 %v2590_v4  ;;  %v2611_v10 = vld [vmem:[#allocation7 + $0xb0] ss:$12 sps:$4 sm:$0xff]   ;;  %v2599_v11 = vld [vmem:[#allocation7 + $0x4c] ss:$12 sps:$4 sm:$0xff]   ;;  %v2602_v14 = vld [vmem:[#allocation7 + $0x34] ss:$12 sps:$4 sm:$0xff]  }
  0xa2   : > { %2396 = vmatpush3.bf16.msra.mxu1 %v2611_v10  ;;  %v2612_v12 = vld [vmem:[#allocation7 + $0x98] ss:$12 sps:$4 sm:$0xff]   ;;  %v2604_v15 = vld [vmem:[#allocation7 + $0x30] ss:$12 sps:$4 sm:$0xff]   ;;  %v2613_v16 = vld [vmem:[#allocation7 + $0x80] ss:$12 sps:$4 sm:$0xff]  }
  0xa3   : > { %2397 = vmatprep.subr.bf16.mxu1 %v2982_v1  ;;  %v2605_v17 = vld [vmem:[#allocation7 + $0x1c] ss:$12 sps:$4 sm:$0xff]   ;;  %v2607_v19 = vld [vmem:[#allocation7 + $0x18] ss:$12 sps:$4 sm:$0xff]   ;;  %v2610_v22 = vld [vmem:[#allocation7] ss:$12 sps:$4 sm:$0xff]  }
  0xa4   : > { %687 = vmatpush1.bf16.msra.mxu0 %v2592_v5  ;;  %v2614_v18 = vld [vmem:[#allocation7 + $0x68] ss:$12 sps:$4 sm:$0xff]   ;;  %v2608_v20 = vld [vmem:[#allocation7 + $0x4] ss:$12 sps:$4 sm:$0xff]   ;;  %v2617_v26 = vld [vmem:[#allocation7 + $0x20] ss:$12 sps:$4 sm:$0xff]  }
  0xa5   : > { %688 = vmatprep.subr.bf16.mxu0 %v2593_v6  ;;  %v2615_v21 = vld [vmem:[#allocation7 + $0x50] ss:$12 sps:$4 sm:$0xff]   ;;  %v2616_v24 = vld [vmem:[#allocation7 + $0x38] ss:$12 sps:$4 sm:$0xff]   ;;  %v2618_v27 = vld [vmem:[#allocation7 + $0x8] ss:$12 sps:$4 sm:$0xff]  }
  0xa6   : > { %2398 = vmatpush3.bf16.msra.mxu1 %v2612_v12  ;;  %v3283_v23 = vld [vmem:[%s3251_s15] sm:$0xff]  ;;  %s2984_s29 = smov 96   ;;  %vm841_vm2 = vcmask 1043456   ;;  %s2985_s17 = smov 64   ;;  %v3314_v44 = vshrl.u32 %v773_v42, 7  ;;  %vm825_vm4 = vcmask 64512  }
  0xa7   : > { %2399 = vmatprep.subr.bf16.mxu1 %v2982_v1  ;;  %v523_v25 = vpack.c.bf16 %v3283_v23, %v3283_v23  ;;  %s2986_s8 = smov 32   ;;  %v766_v43 = vld [vmem:[%s460_s19] sm:$0x1]  ;;  %vm1231_vm5 = vcmask 523264   ;;  %vm1233_vm6 = vcmask 785408   ;;  %s2314_s19 = sshll.u32 %s3074_s27, 7 }
  0xa8   : > { %689 = vmatpush1.bf16.msra.mxu0 %v2595_v7  ;;  %vm767_vm3 = vcmp.eq.s32.totalorder %v766_v43, 0  ;;  %v775_v45 = vsub.s32 0, %v3314_v44  ;;  %s2057_s2 = scalar_lea.hbm %s3465_s12, %s2314_s19  ;;  %s2046_s3 = scalar_lea.sflag [#allocation4], %s3245_s0 }
  0xa9   : > { %690 = vmatprep.subr.bf16.mxu0 %v2596_v8  ;;  %v768_v46 = vsel %vm767_vm3, -1e+20, %v2982_v1  ;;  %p3504_p9 = scmp.ne.s32.totalorder %s3490_s26, 0  ;;  %s2987_s14 = smov [#allocation13]  }
  0xaa   : > { %2400 = vmatpush3.bf16.msra.mxu1 %v2613_v16  ;;  %v3320_v47 = vrot.slane %v768_v46, %v775_v45  ;;  %s2891_s23 = sshll.u32 %s2987_s14, 4  ;;  %s2892_s23 = int_to_ptr.vmem [resolvable:$false] %s2891_s23 }
  0xab   : > { %2401 = vmatprep.subr.bf16.mxu1 %v2982_v1  ;;  %s2893_s27 = scalar_lea.vmem %s2892_s23, 256 }
  0xac   : > { %691 = vmatpush1.bf16.msra.mxu0 %v2598_v9 }
  0xad   : > { %692 = vmatprep.subr.bf16.mxu0 %v2599_v11 }
  0xae   : > { %2402 = vmatpush3.bf16.msra.mxu1 %v2614_v18 }
  0xaf   : > { %2403 = vmatprep.subr.bf16.mxu1 %v2982_v1 }
  0xb0   : > { %693 = vmatpush1.bf16.msra.mxu0 %v2601_v13 }
  0xb1   : > { %694 = vmatprep.subr.bf16.mxu0 %v2602_v14 }
  0xb2   : > { %2404 = vmatpush3.bf16.msra.mxu1 %v2615_v21 }
  0xb3   : > { %2405 = vmatprep.subr.bf16.mxu1 %v2982_v1 }
  0xb4   : > { %695 = vmatpush1.bf16.msra.mxu0 %v2604_v15 }
  0xb5   : > { %696 = vmatprep.subr.bf16.mxu0 %v2605_v17 }
  0xb6   : > { %2406 = vmatpush3.bf16.msra.mxu1 %v2616_v24 }
  0xb7   : > { %2407 = vmatprep.subr.bf16.mxu1 %v2982_v1 }
  0xb8   : > { %697 = vmatpush1.bf16.msra.mxu0 %v2607_v19 }
  0xb9   : > { %698 = vmatprep.subr.bf16.mxu0 %v2608_v20 }
  0xba   : > { %2408 = vmatpush3.bf16.msra.mxu1 %v2617_v26 }
  0xbb   : > { %2409 = vmatprep.subr.bf16.mxu1 %v2982_v1 }
  0xbc   : > { %699 = vmatpush1.bf16.msra.mxu0 %v2610_v22 }
  0xbd   : > { %2439 = vmatprep.subr.bf16.mxu0 %v2982_v1 }
  0xbe   : > { %2410 = vmatpush3.bf16.msra.mxu1 %v2618_v27 }
  0xbf   : > { %717 = vmatmul.mubr.bf16.vlgmr.msra.gmra.mxu0 %v523_v25  ;;  %2415 = vmatprep.subr.bf16.mxu1 %v2982_v1 }
  0xc0   : > { %2441 = vmatprep.mubr.msk.bf16.mxu0 %vm2983_vm0, %v2982_v1 }
  0xc1   : > { %2412 = vmatmul.mubr.bf16.vlgmr.msra.gmra.mxu1 %v523_v25 }
  0xc2   : > { %2417 = vmatprep.mubr.msk.bf16.mxu1 %vm2983_vm0, %v2982_v1 }
 0x17f   : > { %v718_v28 = vpop.f32.mrf.mxu0 }
 0x180   : > { %v765_v30 = vmul.f32 0.088388346, %v718_v28 }
 0x181   : > { %v720_v29 = vpop.f32.mrf.mxu0  ;;  %v759_v36 = vpop.f32.mrf.mxu1 }
 0x182   : > { %v770_v31 = vpack.c.bf16 %v720_v29, %v720_v29  ;;  %v769_v35 = vpack.c.bf16 %v765_v30, %v765_v30  ;;  %v3301_v37 = vpack.c.bf16 %v759_v36, %v759_v36 }
 0x183   : > { %v722_v32 = vpop.f32.mrf.mxu0  ;;  %v2413_v38 = vpop.f32.mrf.mxu1 }
 0x184   : > { %889 = vrot.lane.b32.xlu1 %v770_v31, %s2984_s29  ;;  %v783_v33 = vsel %vm778_vm1, %v770_v31, 0  ;;  %v843_v39 = vsel %vm841_vm2, %v3301_v37, 0 }
 0x185   : > { %v723_v34 = vpop.f32.mrf.mxu0  ;;  %2416 = vmatpush3.bf16.xpose.msra.mxu1 %v783_v33  ;;  %v762_v40 = vpop.f32.mrf.mxu1 }
 0x186   : > { %2421 = vmatprep.subr.bf16.mxu1 %v2982_v1 }
 0x187   : > { %v2414_v41 = vpop.f32.mrf.mxu1 }
 0x188   : > { %886 = vrot.lane.b32.xlu1 %v769_v35, %s2984_s29 }
 0x18c   : > { %998 = vrot.lane.b32.xlu1 %v769_v35, %s2985_s17  ;;  %2418 = vmatmul.mubr.msk.bf16.vlgmr.msra.gmra.mxu1 %vm778_vm1, %v769_v35 }
 0x18d   : > { %2422 = vmatpush3.bf16.msra.mxu1 %v843_v39  ;;  %2423 = vmatprep.mubr.msk.bf16.mxu1 %vm2983_vm0, %v2982_v1 }
 0x18e   : > { %2427 = vmatprep.subr.bf16.mxu1 %v2982_v1 }
 0x190   : > { %1110 = vrot.lane.b32.xlu1 %v770_v31, %s2986_s8 }
 0x194   : > { %1108 = vrot.lane.b32.xlu1 %v769_v35, %s2986_s8 }
 0x1f6   : > { %v890_v59 = vpop.permute.xlu1 %889 }
 0x1f7   : > { %v895_v8 = vsel %vm778_vm1, %v890_v59, 0 }
 0x1fa   : > { %v887_v60 = vpop.permute.xlu1 %886 }
 0x1fe   : > { %v999_v62 = vpop.permute.xlu1 %998 }
 0x202   : > { %v1111_v3 = vpop.permute.xlu1 %1110 }
 0x203   : > { %v1116_v4 = vsel %vm778_vm1, %v1111_v3, 0 }
 0x206   : > { %v1109_v9 = vpop.permute.xlu1 %1108 }
 0x24c   : > { %v819_v48 = vpop.f32.mrf.mxu1 }
 0x24d   : > { %v820_v49 = vadd.f32 %v819_v48, %v3320_v47 }
 0x24e   : > { %v2419_v50 = vpop.f32.mrf.mxu1 }
 0x24f   : > { %v826_v51 = vsel %vm825_vm4, %v820_v49, -inf }
 0x250   : > { %827 = vmax.xlane.f32.xlu0 %v826_v51  ;;  %v822_v52 = vpop.f32.mrf.mxu1 }
 0x252   : > { %v2420_v53 = vpop.f32.mrf.mxu1 }
 0x2d9   : > { %v828_v54 = vpop.xlane.xlu0 %827 }
 0x2da   : > { %v829_v55 = vsub.f32 %v820_v49, %v828_v54 }
 0x2dc   : > { %v830_v56 = vmul.f32 1.442695, %v829_v55 }
 0x2de   : > { %2707 = vpow2.f32 %v830_v56 }
 0x2eb   : > { %v2708_v57 = vpop.eup %2707 }
 0x2ec   : > { %v832_v58 = vsel %vm825_vm4, %v2708_v57, 0.0 }
 0x2ed   : > { %833 = vadd.xlane.f32.xlu0 %v832_v58 }
 0x303   : > { %1000 = vrot.lane.b32.xlu0 %v770_v31, %s2985_s17 }
 0x376   : > { %v834_v61 = vpop.xlane.xlu0 %833 }
 0x377   : > { %2709 = vrcp.f32 %v834_v61 }
 0x37a   : > { %v1001_v63 = vpop.permute.xlu0 %1000 }
 0x37b   : > { %v1006_v2 = vsel %vm778_vm1, %v1001_v63, 0 }
 0x37c   : > { %2440 = vmatpush3.bf16.xpose.msra.mxu0 %v1006_v2 }
 0x37d   : > { %2451 = vmatprep.subr.bf16.mxu0 %v2982_v1 }
 0x383   : > { %2442 = vmatmul.mubr.msk.bf16.vlgmr.msra.gmra.mxu0 %vm778_vm1, %v999_v62 }
 0x384   : > { %v2710_v5 = vpop.eup %2709  ;;  %2452 = vmatpush3.bf16.xpose.msra.mxu0 %v1116_v4  ;;  %2453 = vmatprep.mubr.msk.bf16.mxu0 %vm2983_vm0, %v2982_v1 }
 0x385   : > { %v836_v6 = vmul.f32 %v2710_v5, %v2708_v57  ;;  %2463 = vmatprep.subr.bf16.mxu0 %v2982_v1 }
 0x387   : > { %v837_v7 = vpack.c.bf16 %v836_v6, %v836_v6  ;;  %v2619_v6 = vld [vmem:[#allocation8 + $0x38] sm:$0xff]  }
 0x389   : > { %2424 = vmatmul.mubr.msk.bf16.vlgmr.msra.gmra.mxu1 %vm825_vm4, %v837_v7  ;;  %v2620_v7 = vld [vmem:[#allocation8 + $0x30] sm:$0xff]  }
 0x38a   : > { %2428 = vmatpush3.bf16.xpose.msra.mxu1 %v895_v8  ;;  %2429 = vmatprep.mubr.msk.bf16.mxu1 %vm2983_vm0, %v2982_v1  ;;  %v2621_v8 = vld [vmem:[#allocation8 + $0x28] sm:$0xff]  }
 0x38b   : > { %2454 = vmatmul.mubr.msk.bf16.vlgmr.msra.gmra.mxu0 %vm778_vm1, %v1109_v9  ;;  %2433 = vmatprep.subr.bf16.mxu1 %v2982_v1  ;;  %v2622_v9 = vld [vmem:[#allocation8 + $0x20] sm:$0xff]  }
 0x38c   : > { %2479 = vmatprep.mubr.msk.bf16.mxu0 %vm2983_vm0, %v2982_v1  ;;  %2464 = vmatpush3.bf16.msra.mxu0 %v2619_v6  ;;  %v2663_v6 = vld [vmem:[#allocation10 + $0x20] ss:$16 sps:$4 sm:$0xff]  }
 0x38d   : > { %2465 = vmatprep.subr.bf16.mxu0 %v2982_v1 }
 0x390   : > { %2466 = vmatpush3.bf16.msra.mxu0 %v2620_v7  ;;  %v2666_v7 = vld [vmem:[#allocation10 + $0x28] ss:$16 sps:$4 sm:$0xff]  }
 0x391   : > { %2430 = vmatmul.mubr.msk.bf16.vlgmr.msra.gmra.mxu1 %vm778_vm1, %v887_v60  ;;  %2467 = vmatprep.subr.bf16.mxu0 %v2982_v1 }
 0x392   : > { %2435 = vmatprep.mubr.msk.bf16.mxu1 %vm2983_vm0, %v2982_v1 }
 0x394   : > { %2468 = vmatpush3.bf16.msra.mxu0 %v2621_v8  ;;  %v2671_v8 = vld [vmem:[#allocation10 + $0x4] ss:$16 sps:$4 sm:$0xff]  }
 0x395   : > { %2469 = vmatprep.subr.bf16.mxu0 %v2982_v1 }
 0x398   : > { %2470 = vmatpush3.bf16.msra.mxu0 %v2622_v9  ;;  %v2674_v9 = vld [vmem:[#allocation10 + $0xc] ss:$16 sps:$4 sm:$0xff]  }
 0x399   : > { %2471 = vmatprep.subr.bf16.mxu0 %v2982_v1 }
 0x443   : > { %v1042_v10 = vpop.f32.mrf.mxu0 }
 0x444   : > { %v1043_v11 = vadd.f32 %v1042_v10, %v3320_v47  ;;  %v2623_v10 = vld [vmem:[#allocation8 + $0x18] sm:$0xff]  }
 0x445   : > { %v2443_v12 = vpop.f32.mrf.mxu0  ;;  %2472 = vmatpush3.bf16.msra.mxu0 %v2623_v10  ;;  %v2669_v10 = vld [vmem:[#allocation10] ss:$16 sps:$4 sm:$0xff]  }
 0x446   : > { %v1048_v13 = vsel %vm825_vm4, %v1043_v11, -inf  ;;  %2473 = vmatprep.subr.bf16.mxu0 %v2982_v1  ;;  %v2625_v12 = vld [vmem:[#allocation8 + $0x8] sm:$0xff]  }
 0x447   : > { %1049 = vmax.xlane.f32.xlu0 %v1048_v13  ;;  %v1045_v14 = vpop.f32.mrf.mxu0 }
 0x449   : > { %v3346_v15 = vpop.f32.mrf.mxu1  ;;  %v2444_v16 = vpop.f32.mrf.mxu0 }
 0x44a   : > { %v2626_v16 = vld [vmem:[#allocation8] sm:$0xff]  }
 0x44b   : > { %v2425_v17 = vpop.f32.mrf.mxu1  ;;  %v1152_v18 = vpop.f32.mrf.mxu0 }
 0x44c   : > { %v1153_v28 = vadd.f32 %v1152_v18, %v3320_v47 }
 0x44d   : > { %v882_v19 = vpop.f32.mrf.mxu1  ;;  %v2455_v20 = vpop.f32.mrf.mxu0 }
 0x44e   : > { %v1158_v32 = vsel %vm825_vm4, %v1153_v28, -inf }
 0x44f   : > { %v2426_v21 = vpop.f32.mrf.mxu1  ;;  %v1155_v22 = vpop.f32.mrf.mxu0 }
 0x451   : > { %v931_v24 = vpop.f32.mrf.mxu1  ;;  %v2456_v25 = vpop.f32.mrf.mxu0 }
 0x452   : > { %v932_v26 = vadd.f32 %v931_v24, %v3320_v47 }
 0x453   : > { %v2431_v27 = vpop.f32.mrf.mxu1 }
 0x454   : > { %v937_v29 = vsel %vm825_vm4, %v932_v26, -inf }
 0x455   : > { %938 = vmax.xlane.f32.xlu1 %v937_v29  ;;  %v934_v30 = vpop.f32.mrf.mxu1 }
 0x457   : > { %v2432_v31 = vpop.f32.mrf.mxu1 }
 0x459   : > { %1159 = vmax.xlane.f32.xlu1 %v1158_v32 }
 0x4d0   : > { %v1050_v33 = vpop.xlane.xlu0 %1049 }
 0x4d1   : > { %v1051_v34 = vsub.f32 %v1043_v11, %v1050_v33  ;;  %v2624_v11 = vld [vmem:[#allocation8 + $0x10] sm:$0xff]  }
 0x4d2   : > { %2474 = vmatpush3.bf16.msra.mxu0 %v2624_v11  ;;  %v2672_v11 = vld [vmem:[#allocation10 + $0x8] ss:$16 sps:$4 sm:$0xff]  }
 0x4d3   : > { %v1052_v35 = vmul.f32 1.442695, %v1051_v34  ;;  %2475 = vmatprep.subr.bf16.mxu0 %v2982_v1 }
 0x4d5   : > { %2711 = vpow2.f32 %v1052_v35 }
 0x4d6   : > { %2476 = vmatpush3.bf16.msra.mxu0 %v2625_v12  ;;  %v2675_v12 = vld [vmem:[#allocation11 + $0x78] sm:$0xff]  }
 0x4d7   : > { %2477 = vmatprep.subr.bf16.mxu0 %v2982_v1 }
 0x4da   : > { %2478 = vmatpush3.bf16.msra.mxu0 %v2626_v16 }
 0x4de   : > { %v939_v36 = vpop.xlane.xlu1 %938 }
 0x4df   : > { %v940_v38 = vsub.f32 %v932_v26, %v939_v36 }
 0x4e1   : > { %v941_v43 = vmul.f32 1.442695, %v940_v38 }
 0x4e2   : > { %v2712_v39 = vpop.eup %2711  ;;  %v1160_v40 = vpop.xlane.xlu1 %1159 }
 0x4e3   : > { %v1161_v41 = vsub.f32 %v1153_v28, %v1160_v40  ;;  %v1054_v42 = vsel %vm825_vm4, %v2712_v39, 0.0  ;;  %v2627_v40 = vld [vmem:[#allocation10 + $0xe0] ss:$16 sps:$4 sm:$0xff]  }
 0x4e4   : > { %1055 = vadd.xlane.f32.xlu0 %v1054_v42  ;;  %v2630_v42 = vld [vmem:[#allocation10 + $0xe8] ss:$16 sps:$4 sm:$0xff]  }
 0x4e5   : > { %v1162_v46 = vmul.f32 1.442695, %v1161_v41  ;;  %v2629_v41 = vld [vmem:[#allocation10 + $0xe4] ss:$16 sps:$4 sm:$0xff]  }
 0x4e7   : > { %2713 = vpow2.f32 %v1162_v46  ;;  %v2635_v46 = vld [vmem:[#allocation10 + $0xc4] ss:$16 sps:$4 sm:$0xff]  }
 0x4e8   : > { %2715 = vpow2.f32 %v941_v43  ;;  %v2632_v43 = vld [vmem:[#allocation10 + $0xec] ss:$16 sps:$4 sm:$0xff]  }
 0x4e9   : > { %1624 = vmatprep.subr.bf16.mxu0 %v2632_v43  ;;  %v2694_v43 = vld [vmem:[#allocation11 + $0x98] sm:$0xff]  }
 0x4f4   : > { %v2714_v47 = vpop.eup %2713 }
 0x4f5   : > { %v1164_v48 = vsel %vm825_vm4, %v2714_v47, 0.0  ;;  %v2716_v49 = vpop.eup %2715 }
 0x4f6   : > { %1165 = vadd.xlane.f32.xlu1 %v1164_v48  ;;  %v943_v50 = vsel %vm825_vm4, %v2716_v49, 0.0 }
 0x4fa   : > { %950 = vrot.lane.b32.xlu0 %v3301_v37, %s2984_s29  ;;  %944 = vadd.xlane.f32.xlu1 %v943_v50 }
 0x50b   : > { %1060 = vrot.lane.b32.xlu1 %v3301_v37, %s2985_s17 }
 0x50f   : > { %1170 = vrot.lane.b32.xlu1 %v3301_v37, %s2986_s8 }
 0x56d   : > { %v1056_v51 = vpop.xlane.xlu0 %1055 }
 0x571   : > { %v951_v52 = vpop.permute.xlu0 %950 }
 0x572   : > { %v956_v53 = vsel %vm841_vm2, %v951_v52, 0  ;;  %v2644_v52 = vld [vmem:[#allocation10 + $0xac] ss:$16 sps:$4 sm:$0xff]  }
 0x573   : > { %2434 = vmatpush3.bf16.msra.mxu1 %v956_v53  ;;  %v2639_v53 = vld [vmem:[#allocation10 + $0xa0] ss:$16 sps:$4 sm:$0xff]  }
 0x574   : > { %2445 = vmatprep.subr.bf16.mxu1 %v2982_v1 }
 0x57f   : > { %v1166_v54 = vpop.xlane.xlu1 %1165 }
 0x583   : > { %v945_v55 = vpop.xlane.xlu1 %944 }
 0x584   : > { %2717 = vrcp.f32 %v945_v55  ;;  %v2645_v55 = vld [vmem:[#allocation10 + $0x80] ss:$16 sps:$4 sm:$0xff]  }
 0x585   : > { %2719 = vrcp.f32 %v1056_v51  ;;  %v2641_v51 = vld [vmem:[#allocation10 + $0xa4] ss:$16 sps:$4 sm:$0xff]  }
 0x586   : > { %2721 = vrcp.f32 %v1166_v54  ;;  %v2642_v54 = vld [vmem:[#allocation10 + $0xa8] ss:$16 sps:$4 sm:$0xff]  }
 0x587   : > { %v1061_v58 = vpop.permute.xlu1 %1060 }
 0x588   : > { %v1066_v61 = vsel %vm841_vm2, %v1061_v58, 0  ;;  %v2650_v58 = vld [vmem:[#allocation10 + $0x8c] ss:$16 sps:$4 sm:$0xff]  }
 0x58b   : > { %v1171_v62 = vpop.permute.xlu1 %1170 }
 0x58c   : > { %v1176_v3 = vsel %vm841_vm2, %v1171_v62, 0  ;;  %v2659_v62 = vld [vmem:[#allocation10 + $0x44] ss:$16 sps:$4 sm:$0xff]  }
 0x591   : > { %v2718_v56 = vpop.eup %2717 }
 0x592   : > { %v947_v57 = vmul.f32 %v2718_v56, %v2716_v49  ;;  %v2720_v60 = vpop.eup %2719  ;;  %v2647_v56 = vld [vmem:[#allocation10 + $0x84] ss:$16 sps:$4 sm:$0xff]  }
 0x593   : > { %v1058_v37 = vmul.f32 %v2720_v60, %v2712_v39  ;;  %v2722_v2 = vpop.eup %2721  ;;  %v2656_v60 = vld [vmem:[#allocation10 + $0x6c] ss:$16 sps:$4 sm:$0xff]  }
 0x594   : > { %v948_v59 = vpack.c.bf16 %v947_v57, %v947_v57  ;;  %v1168_v4 = vmul.f32 %v2722_v2, %v2714_v47  ;;  %v2633_v47 = vld [vmem:[#allocation10 + $0xc0] ss:$16 sps:$4 sm:$0xff]   ;;  %v2648_v57 = vld [vmem:[#allocation10 + $0x88] ss:$16 sps:$4 sm:$0xff]  }
 0x595   : > { %v1059_v63 = vpack.c.bf16 %v1058_v37, %v1058_v37  ;;  %v2654_v37 = vld [vmem:[#allocation10 + $0x68] ss:$16 sps:$4 sm:$0xff]   ;;  %v2657_v2 = vld [vmem:[#allocation10 + $0x40] ss:$16 sps:$4 sm:$0xff]  }
 0x596   : > { %2436 = vmatmul.mubr.msk.bf16.vlgmr.msra.gmra.mxu1 %vm825_vm4, %v948_v59  ;;  %v1169_v5 = vpack.c.bf16 %v1168_v4, %v1168_v4  ;;  %v2653_v59 = vld [vmem:[#allocation10 + $0x64] ss:$16 sps:$4 sm:$0xff]  }
 0x597   : > { %2446 = vmatpush3.bf16.msra.mxu1 %v1066_v61  ;;  %2447 = vmatprep.mubr.msk.bf16.mxu1 %vm2983_vm0, %v2982_v1  ;;  %v2651_v61 = vld [vmem:[#allocation10 + $0x60] ss:$16 sps:$4 sm:$0xff]   ;;  %v2665_v4 = vld [vmem:[#allocation10 + $0x24] ss:$16 sps:$4 sm:$0xff]  }
 0x598   : > { %2457 = vmatprep.subr.bf16.mxu1 %v2982_v1 }
 0x59e   : > { %2448 = vmatmul.mubr.msk.bf16.vlgmr.msra.gmra.mxu1 %vm825_vm4, %v1059_v63  ;;  %v2662_v63 = vld [vmem:[#allocation10 + $0x4c] ss:$16 sps:$4 sm:$0xff]  }
 0x59f   : > { %2458 = vmatpush3.bf16.msra.mxu1 %v1176_v3  ;;  %2459 = vmatprep.mubr.msk.bf16.mxu1 %vm2983_vm0, %v2982_v1  ;;  %v2660_v3 = vld [vmem:[#allocation10 + $0x48] ss:$16 sps:$4 sm:$0xff]  }
 0x5a0   : > { %1583 = vmatprep.subr.bf16.mxu1 %v2629_v41  ;;  %v2692_v41 = vld [vmem:[#allocation11 + $0xd8] sm:$0xff]  }
 0x5a6   : > { %2460 = vmatmul.mubr.msk.bf16.vlgmr.msra.gmra.mxu1 %vm825_vm4, %v1169_v5  ;;  %v2668_v5 = vld [vmem:[#allocation10 + $0x2c] ss:$16 sps:$4 sm:$0xff]  }
 0x5a7   : > { %1615 = vmatprep.mubr.bf16.mxu1 %v2981_v0  ;;  %1584 = vmatpush1.bf16.msra.mxu1 %v2627_v40  ;;  %v2691_v40 = vld [vmem:[#allocation11 + $0x58] sm:$0xff]  }
 0x5a8   : > { %1585 = vmatprep.subr.bf16.mxu1 %v2635_v46  ;;  %v2695_v46 = vld [vmem:[#allocation11 + $0x50] sm:$0xff]  }
 0x5ab   : > { %1586 = vmatpush1.bf16.msra.mxu1 %v2633_v47  ;;  %v2697_v47 = vld [vmem:[#allocation11 + $0x10] sm:$0xff]  }
 0x5ac   : > { %1587 = vmatprep.subr.bf16.mxu1 %v2641_v51  ;;  %v2703_v51 = vld [vmem:[#allocation11 + $0x40] sm:$0xff]  }
 0x5af   : > { %1588 = vmatpush1.bf16.msra.mxu1 %v2639_v53  ;;  %v2705_v53 = vld [vmem:[#allocation11] sm:$0xff]  }
 0x5b0   : > { %1589 = vmatprep.subr.bf16.mxu1 %v2647_v56  ;;  %v1401_v56 = vld [vmem:[%s3460_s7] sm:$0xf] }
 0x5b3   : > { %1590 = vmatpush1.bf16.msra.mxu1 %v2645_v55  ;;  %v1413_v55 = vsub.s32 2, %v3314_v44 }
 0x5b4   : > { %1591 = vmatprep.subr.bf16.mxu1 %v2653_v59  ;;  %v1406_v59 = vrot.slane %v1401_v56, %v775_v45 }
 0x5b7   : > { %1592 = vmatpush1.bf16.msra.mxu1 %v2651_v61 }
 0x5b8   : > { %1593 = vmatprep.subr.bf16.mxu1 %v2659_v62 }
 0x5bb   : > { %1594 = vmatpush1.bf16.msra.mxu1 %v2657_v2 }
 0x5bc   : > { %1595 = vmatprep.subr.bf16.mxu1 %v2665_v4 }
 0x5bf   : > { %1596 = vmatpush1.bf16.msra.mxu1 %v2663_v6 }
 0x5c0   : > { %1597 = vmatprep.subr.bf16.mxu1 %v2671_v8 }
 0x5c3   : > { %1598 = vmatpush1.bf16.msra.mxu1 %v2669_v10 }
 0x5c4   : > { %2351 = vmatprep.subr.bf16.mxu1 %v2675_v12 }
 0x656   : > { %v992_v13 = vpop.f32.mrf.mxu1 }
 0x657   : > { %1219 = vrot.lane.b32.xlu0 %v992_v13, %s2986_s8  ;;  %v2676_v13 = vld [vmem:[#allocation11 + $0xf8] sm:$0xff]  }
 0x658   : > { %v2437_v14 = vpop.f32.mrf.mxu1 }
 0x65a   : > { %v995_v17 = vpop.f32.mrf.mxu1 }
 0x65c   : > { %v2438_v18 = vpop.f32.mrf.mxu1 }
 0x65e   : > { %v1102_v19 = vpop.f32.mrf.mxu1 }
 0x65f   : > { %1223 = vrot.lane.b32.xlu1 %v1102_v19, %s2985_s17  ;;  %v2244_v19 = vld [vmem:[%s3457_s4] ss:$0 sm:$0xff] }
 0x660   : > { %v2449_v20 = vpop.f32.mrf.mxu1 }
 0x662   : > { %v1105_v21 = vpop.f32.mrf.mxu1 }
 0x663   : > { %v2245_v21 = vld [vmem:[%s3458_s5] ss:$0 sm:$0xff] }
 0x664   : > { %v2450_v22 = vpop.f32.mrf.mxu1 }
 0x666   : > { %v1212_v24 = vpop.f32.mrf.mxu1 }
 0x667   : > { %1227 = vrot.lane.b32.xlu0 %v1212_v24, %s2984_s29  ;;  %s520_s29 = scalar_lea.vmem [#allocation13], %s2198_s16 }
 0x668   : > { %v2461_v25 = vpop.f32.mrf.mxu1  ;;  %s2059_s17 = sshll.u32 %s520_s29, 4  ;;  %s2060_s17 = int_to_ptr.vmem [resolvable:$true] %s2059_s17 }
 0x669   : > { %v2677_v25 = vld [vmem:[#allocation11 + $0x38] sm:$0xff]   ;;  %s2887_s25 = scalar_lea.vmem %s2060_s17, 128  ;;  %p2894_p1 = scmp.lt.s32.totalorder %s2060_s17, %s2892_s23 }
 0x66a   : > { %v1215_v26 = vpop.f32.mrf.mxu1  ;;  %p2888_p2 = scmp.ne.s32.totalorder %s2060_s17, %s2887_s25  ;;  %p2895_p4 = scmp.lt.s32.totalorder %s2893_s27, %s2887_s25 }
 0x66b   : > { %v2678_v26 = vld [vmem:[#allocation11 + $0xb8] sm:$0xff]  }
 0x66c   : > { %v2462_v27 = vpop.f32.mrf.mxu1  ;;  %p2889_p11 = pnand %p2888_p2, %p3504_p9  ;;  %p2896_p6 = por %p2895_p4, %p2894_p1 }
 0x66e   : > { %p2890_p12 = pneg %p2889_p11 }
 0x670   : > { %p2897_p10 = pnand %p2896_p6, %p2890_p12 }
 0x6c9   : > { %v1220_v28 = vpop.permute.xlu0 %1219 }
 0x6ca   : > { %v1230_v1 = vsel %vm778_vm1, %v3346_v15, %v1220_v28  ;;  %v2638_v15 = vld [vmem:[#allocation10 + $0xcc] ss:$16 sps:$4 sm:$0xff]   ;;  %v2679_v28 = vld [vmem:[#allocation11 + $0x70] sm:$0xff]  }
 0x6d1   : > { %v1224_v29 = vpop.permute.xlu1 %1223 }
 0x6d2   : > { %v1232_v30 = vsel %vm1231_vm5, %v1230_v1, %v1224_v29  ;;  %v2680_v29 = vld [vmem:[#allocation11 + $0xf0] sm:$0xff]  }
 0x6d3   : > { %v2681_v1 = vld [vmem:[#allocation11 + $0x30] sm:$0xff]  }
 0x6d9   : > { %v1228_v31 = vpop.permute.xlu0 %1227 }
 0x6da   : > { %v1234_v32 = vsel %vm1233_vm6, %v1232_v30, %v1228_v31  ;;  %v2682_v30 = vld [vmem:[#allocation11 + $0xb0] sm:$0xff]   ;;  %v2683_v31 = vld [vmem:[#allocation11 + $0x68] sm:$0xff]  }
 0x6db   : > { %v1235_v33 = vpack.c.bf16 %v1234_v32, %v1234_v32  ;;  %v2684_v32 = vld [vmem:[#allocation11 + $0xe8] sm:$0xff]  }
 0x6dd   : > { %2480 = vmatmul.mubr.bf16.vlgmr.msra.gmra.mxu0 %v1235_v33  ;;  %v2685_v33 = vld [vmem:[#allocation11 + $0x28] sm:$0xff]  }
 0x6de   : > { %1656 = vmatprep.mubr.bf16.mxu0 %v2981_v0  ;;  %1625 = vmatpush1.bf16.msra.mxu0 %v2630_v42  ;;  %v2636_v0 = vld [vmem:[#allocation10 + $0xc8] ss:$16 sps:$4 sm:$0xff]  }
 0x6df   : > { %1626 = vmatprep.subr.bf16.mxu0 %v2638_v15  ;;  %v2693_v42 = vld [vmem:[#allocation11 + $0x18] sm:$0xff]   ;;  %v2696_v15 = vld [vmem:[#allocation11 + $0xd0] sm:$0xff]  }
 0x6e2   : > { %1627 = vmatpush1.bf16.msra.mxu0 %v2636_v0  ;;  %v2698_v0 = vld [vmem:[#allocation11 + $0x90] sm:$0xff]  }
 0x6e3   : > { %1628 = vmatprep.subr.bf16.mxu0 %v2644_v52  ;;  %v2704_v52 = vld [vmem:[#allocation11 + $0xc0] sm:$0xff]  }
 0x6e6   : > { %1629 = vmatpush1.bf16.msra.mxu0 %v2642_v54  ;;  %v2706_v54 = vld [vmem:[#allocation11 + $0x80] sm:$0xff]  }
 0x6e7   : > { %1630 = vmatprep.subr.bf16.mxu0 %v2650_v58  ;;  %v1417_v58 = vsub.s32 3, %v3314_v44 }
 0x6ea   : > { %1631 = vmatpush1.bf16.msra.mxu0 %v2648_v57  ;;  %v1409_v57 = vsub.s32 1, %v3314_v44 }
 0x6eb   : > { %1632 = vmatprep.subr.bf16.mxu0 %v2656_v60  ;;  %v1414_v60 = vrot.slane %v1401_v56, %v1413_v55 }
 0x6ec   : > { %v1410_v61 = vrot.slane %v1401_v56, %v1409_v57 }
 0x6ee   : > { %1633 = vmatpush1.bf16.msra.mxu0 %v2654_v37  ;;  %v1418_v37 = vrot.slane %v1401_v56, %v1417_v58 }
 0x6ef   : > { %1634 = vmatprep.subr.bf16.mxu0 %v2662_v63 }
 0x6f2   : > { %1635 = vmatpush1.bf16.msra.mxu0 %v2660_v3 }
 0x6f3   : > { %1636 = vmatprep.subr.bf16.mxu0 %v2668_v5 }
 0x6f6   : > { %1637 = vmatpush1.bf16.msra.mxu0 %v2666_v7 }
 0x6f7   : > { %1638 = vmatprep.subr.bf16.mxu0 %v2674_v9 }
 0x6fa   : > { %1639 = vmatpush1.bf16.msra.mxu0 %v2672_v11 }
 0x6fb   : > { %2373 = vmatprep.subr.bf16.mxu0 %v2676_v13 }
 0x79d   : > { %v1334_v34 = vpop.f32.mrf.mxu0 }
 0x79e   : > { %v1335_v35 = vadd.f32 %v1334_v34, %v3283_v23  ;;  %v2686_v34 = vld [vmem:[#allocation11 + $0xa8] sm:$0xff]  }
 0x79f   : > { %v2481_v36 = vpop.f32.mrf.mxu0 }
 0x7a0   : > { %1340 = vadd.xlane.f32.xlu1 %v1335_v35  ;;  %v2688_v36 = vld [vmem:[#allocation11 + $0xe0] sm:$0xff]  }
 0x7a1   : > { %v1337_v38 = vpop.f32.mrf.mxu0 }
 0x7a2   : > { %v2689_v38 = vld [vmem:[#allocation11 + $0x20] sm:$0xff]  }
 0x7a3   : > { %v2482_v39 = vpop.f32.mrf.mxu0 }
 0x7a4   : > { %v2690_v39 = vld [vmem:[#allocation11 + $0xa0] sm:$0xff]  }
 0x829   : > { %v1341_v23 = vpop.xlane.xlu1 %1340 }
 0x82a   : > { %v1343_v48 = vmul.f32 0.0078125, %v1341_v23  ;;  %v2699_v23 = vld [vmem:[#allocation11 + $0x48] sm:$0xff]  }
 0x82c   : > { %v1344_v49 = vsub.f32 %v1335_v35, %v1343_v48  ;;  %v2687_v35 = vld [vmem:[#allocation11 + $0x60] sm:$0xff]   ;;  %v2700_v48 = vld [vmem:[#allocation11 + $0xc8] sm:$0xff]  }
 0x82e   : > { %v1345_v50 = vmul.f32 %v1344_v49, %v1344_v49 }
 0x830   : > { %1346 = vadd.xlane.f32.xlu0 %v1345_v50  ;;  %v2702_v50 = vld [vmem:[#allocation11 + $0x88] sm:$0xff]  }
 0x8b9   : > { %v1347_v14 = vpop.xlane.xlu0 %1346 }
 0x8ba   : > { %v1348_v16 = vmul.f32 0.0078125, %v1347_v14 }
 0x8bc   : > { %v1349_v17 = vadd.f32 1e-05, %v1348_v16 }
 0x8be   : > { %2723 = vrsqrt.f32 %v1349_v17 }
 0x8cb   : > { %v2724_v18 = vpop.eup %2723 }
 0x8cc   : > { %v1351_v20 = vmul.f32 %v2724_v18, %v1344_v49  ;;  %v2701_v49 = vld [vmem:[#allocation11 + $0x8] sm:$0xff]  }
 0x8ce   : > { %v1359_v22 = vmul.f32 %v2244_v19, %v1351_v20 }
 0x8d0   : > { %v3394_v24 = vadd.f32 %v2245_v21, %v1359_v22  ;;  %v2278_v21 = vld [vmem:[%s3462_s9] ss:$0 sm:$0xff] }
 0x8d2   : > { %v1368_v27 = vpack.c.bf16 %v3394_v24, %v3394_v24 }
 0x8d4   : > { %1616 = vmatmul.mubr.bf16.vlgmr.msra.gmra.mxu1 %v1368_v27  ;;  %1657 = vmatmul.mubr.bf16.vlgmr.msra.gmra.mxu0 %v1368_v27 }
 0x8d5   : > { %2352 = vmatpush3.bf16.msra.mxu1 %v2677_v25  ;;  %2374 = vmatpush3.bf16.msra.mxu0 %v2678_v26 }
 0x8d6   : > { %2353 = vmatprep.subr.bf16.mxu1 %v2679_v28  ;;  %2375 = vmatprep.subr.bf16.mxu0 %v2680_v29 }
 0x8d9   : > { %2354 = vmatpush3.bf16.msra.mxu1 %v2681_v1  ;;  %2376 = vmatpush3.bf16.msra.mxu0 %v2682_v30 }
 0x8da   : > { %2355 = vmatprep.subr.bf16.mxu1 %v2683_v31  ;;  %2377 = vmatprep.subr.bf16.mxu0 %v2684_v32 }
 0x8dd   : > { %2356 = vmatpush3.bf16.msra.mxu1 %v2685_v33  ;;  %2378 = vmatpush3.bf16.msra.mxu0 %v2686_v34 }
 0x8de   : > { %2357 = vmatprep.subr.bf16.mxu1 %v2687_v35  ;;  %2379 = vmatprep.subr.bf16.mxu0 %v2688_v36 }
 0x8e1   : > { %2358 = vmatpush3.bf16.msra.mxu1 %v2689_v38  ;;  %2380 = vmatpush3.bf16.msra.mxu0 %v2690_v39 }
 0x8e2   : > { %2359 = vmatprep.subr.bf16.mxu1 %v2691_v40  ;;  %2381 = vmatprep.subr.bf16.mxu0 %v2692_v41 }
 0x8e5   : > { %2360 = vmatpush3.bf16.msra.mxu1 %v2693_v42  ;;  %2382 = vmatpush3.bf16.msra.mxu0 %v2694_v43  ;;  %v2311_v43 = vld [vmem:[%s3463_s10] ss:$0 sm:$0xff] }
 0x8e6   : > { %2361 = vmatprep.subr.bf16.mxu1 %v2695_v46  ;;  %2383 = vmatprep.subr.bf16.mxu0 %v2696_v15 }
 0x8e9   : > { %2362 = vmatpush3.bf16.msra.mxu1 %v2697_v47  ;;  %2384 = vmatpush3.bf16.msra.mxu0 %v2698_v0 }
 0x8ea   : > { %2363 = vmatprep.subr.bf16.mxu1 %v2699_v23  ;;  %2385 = vmatprep.subr.bf16.mxu0 %v2700_v48 }
 0x8ed   : > { %2364 = vmatpush3.bf16.msra.mxu1 %v2701_v49  ;;  %2386 = vmatpush3.bf16.msra.mxu0 %v2702_v50 }
 0x8ee   : > { %2365 = vmatprep.subr.bf16.mxu1 %v2703_v51  ;;  %2387 = vmatprep.subr.bf16.mxu0 %v2704_v52 }
 0x8f1   : > { %2366 = vmatpush3.bf16.msra.mxu1 %v2705_v53  ;;  %2388 = vmatpush3.bf16.msra.mxu0 %v2706_v54 }
 0x994   : > { %v1617_v62 = vpop.f32.mrf.mxu1  ;;  %v1658_v63 = vpop.f32.mrf.mxu0 }
 0x995   : > { %v1618_v2 = vadd.f32 %v1617_v62, %v1406_v59  ;;  %v1659_v3 = vadd.f32 %v1658_v63, %v1414_v60 }
 0x996   : > { %v1619_v4 = vpop.f32.mrf.mxu1  ;;  %v1660_v5 = vpop.f32.mrf.mxu0 }
 0x997   : > { %v1620_v6 = vadd.f32 %v1619_v4, %v1410_v61  ;;  %v1661_v7 = vadd.f32 %v1660_v5, %v1418_v37  ;;  %v1665_v8 = vmax.f32 %v1618_v2, 0.0  ;;  %v1667_v9 = vmax.f32 %v1659_v3, 0.0 }
 0x998   : > { %v1621_v10 = vpop.f32.mrf.mxu1  ;;  %v1662_v11 = vpop.f32.mrf.mxu0 }
 0x999   : > { %v1666_v12 = vmax.f32 %v1620_v6, 0.0  ;;  %v1668_v13 = vmax.f32 %v1661_v7, 0.0  ;;  %v1669_v17 = vpack.c.bf16 %v1665_v8, %v1665_v8  ;;  %v1671_v18 = vpack.c.bf16 %v1667_v9, %v1667_v9 }
 0x99a   : > { %v1622_v14 = vpop.f32.mrf.mxu1  ;;  %v1663_v44 = vpop.f32.mrf.mxu0 }
 0x99b   : > { %v1670_v45 = vpack.c.bf16 %v1666_v12, %v1666_v12  ;;  %v1672_v16 = vpack.c.bf16 %v1668_v13, %v1668_v13 }
 0x99d   : > { %1968 = vmatprep.mubr.bf16.mxu1 %v1670_v45  ;;  %2008 = vmatprep.mubr.bf16.mxu0 %v1672_v16 }
 0x99e   : > { %1969 = vmatmul.mubr.bf16.vlgmr.msra.gmra.mxu1 %v1669_v17  ;;  %2009 = vmatmul.mubr.bf16.vlgmr.msra.gmra.mxu0 %v1671_v18 }
 0xa5e   : > { %v2367_v19 = vpop.f32.mrf.mxu1  ;;  %v2389_v20 = vpop.f32.mrf.mxu0 }
 0xa60   : > { %v2368_v22 = vpop.f32.mrf.mxu1  ;;  %v2390_v25 = vpop.f32.mrf.mxu0 }
 0xa61   : > { %v2369_v26 = vadd.f32 %v2368_v22, %v2367_v19  ;;  %v2391_v1 = vadd.f32 %v2390_v25, %v2389_v20 }
 0xa62   : > { %v2370_v27 = vpop.f32.mrf.mxu1  ;;  %v2392_v28 = vpop.f32.mrf.mxu0 }
 0xa63   : > { %v1971_v29 = vadd.f32 %v2369_v26, %v2278_v21 }
 0xa64   : > { %v2371_v30 = vpop.f32.mrf.mxu1  ;;  %v2393_v31 = vpop.f32.mrf.mxu0 }
 0xa65   : > { %v2011_v32 = vadd.f32 %v2391_v1, %v1971_v29 }
 0xa67   : > { %v2016_v33 = vadd.f32 %v2011_v32, %v3394_v24  ;;  %v2312_v24 = vld [vmem:[%s3464_s11] ss:$0 sm:$0xff] }
 0xa69   : > { %2017 = vadd.xlane.f32.xlu0 %v2016_v33 }
 0xaf2   : > { %v2018_v34 = vpop.xlane.xlu0 %2017 }
 0xaf3   : > { %v2019_v35 = vmul.f32 0.0078125, %v2018_v34 }
 0xaf5   : > { %v2020_v36 = vsub.f32 %v2016_v33, %v2019_v35 }
 0xaf7   : > { %v2021_v38 = vmul.f32 %v2020_v36, %v2020_v36 }
 0xaf9   : > { %2022 = vadd.xlane.f32.xlu1 %v2021_v38 }
 0xb82   : > { %v2023_v39 = vpop.xlane.xlu1 %2022 }
 0xb83   : > { %v2024_v40 = vmul.f32 0.0078125, %v2023_v39 }
 0xb85   : > { %v2025_v41 = vadd.f32 1e-05, %v2024_v40 }
 0xb87   : > { %2725 = vrsqrt.f32 %v2025_v41 }
 0xb94   : > { %v2726_v42 = vpop.eup %2725 }
 0xb95   : > { %v2027_v46 = vmul.f32 %v2726_v42, %v2020_v36 }
 0xb97   : > { %v2035_v15 = vmul.f32 %v2311_v43, %v2027_v46 }
 0xb99   : > { %v2043_v47 = vadd.f32 %v2312_v24, %v2035_v15 }
 0xb9b   : > { %2044 = vst [vmem:[%s520_s29] sm:$0xff] %v2043_v47 }
 0xb9c   : > { %2900 = shalt.err (!%p2897_p10)
}
 0xb9d   : > { %s2901_s16 = scalar_lea.hbm %s2057_s2, 128  ;;  %s2905_s18 = scalar_lea.hbm %s3465_s12, 256 }
 0xb9e   : > { %p2902_p3 = scmp.ne.s32.totalorder %s2057_s2, %s2901_s16  ;;  %p2906_p8 = scmp.lt.s32.totalorder %s2057_s2, %s3465_s12 }
 0xb9f   : > { %p2907_p13 = scmp.lt.s32.totalorder %s2905_s18, %s2901_s16 }
 0xba0   : > { %p2903_p7 = pnand %p2902_p3, %p3504_p9 }
 0xba1   : > { %p2908_p0 = por %p2907_p13, %p2906_p8 }
 0xba2   : > { %p2904_p5 = pneg %p2903_p7 }
 0xba4   : > { %p2909_p2 = pnand %p2908_p0, %p2904_p5 }
 0xba6   : > { %2912 = shalt.err (!%p2909_p2)
}
 0xba7   : > { %2503 = dma.vmem_to_hbm [thread:$0]  (%p3504_p9), %s2060_s17, 128, %s2057_s2, %s2046_s3  }
 0xba8 PF: > { %s3505_s6 = sld [smem:[#allocation23_spill]]  ;;  %s2071_s28 = sand.u32 1, %s2955_s21  }
 0xba9   : > { %p3507_p12 = scmp.ge.s32.totalorder %s2967_s24, 2  ;;  %s2072_s19 = scalar_lea.sflag [#allocation4], %s2071_s28 }
 0xbae   : > { %p3506_p11 = scmp.ne.s32.totalorder %s3505_s6, 0 }
 0xbb0   : > { %p2526_p1 = pnand %p3507_p12, %p3506_p11 }
 0xbb2   : > { %p2527_p4 = pneg %p2526_p1 }
 0xbb4   : > { %2950 = dma.done.wait (%p2527_p4), %s2072_s19, 128  }
 0xbb5   : > { %2952 = vsyncadd (%p2527_p4), %s2072_s19, 4294967168  ;;  %s3508_s24 = sld [smem:[#allocation21_spill]]  ;;  %s3511_s21 = smov %s2959_s22 }
 0xbb6   : > { %s3509_s29 = sld [smem:[#allocation20_spill]] }
 0xbb7   : > { %s3510_s23 = sld [smem:[#allocation22_spill]] }
 0xbbb   : > { %p30_p6 = scmp.ge.s32.totalorder %s3508_s24, 4  }
 0xbbc   : > { %s3512_s22 = smov %s3509_s29 }
 0xbbd   :  { %32 = sbr.rel (!%p30_p6) target bundleno = 15 (0xf), region = 142 }
 0xbc2   :  { %2077 = vsyncpa [#allocation3], 1 }
 0xbc3   :  { %2079 = vsyncpa [#allocation3 + $0x1], 1 }
 0xbc4   :  { %2080 = vsyncpa [#allocation6], 1 }
 0xbc5   :  { %2082 = vsyncpa [#allocation6 + $0x1], 1 }
 0xbc6   :  { %2083 = vsyncpa [#allocation9], 1 }
 0xbc7   :  { %2084 = vsyncpa [#allocation12], 1 }
 0xbc8   :  { %2085 = vsyncpa [#allocation4], 1 }
 0xbc9   :  { %2087 = vsyncpa [#allocation4 + $0x1], 1 }

</bundles_post_ra>
